<compile_context>
chip_gen: v5e
topology: v5e:2x2
jax: 0.10.0
libtpu: 0.0.40
codegen_flags: <defaults>
</compile_context>

<pallas_src>
from functools import partial

import jax
import jax.numpy as jnp
from jax.experimental import pallas as pl
from jax.experimental.pallas import tpu as pltpu

EPS = 1e-5     # BatchNorm1d default eps
LANE = 128     # TPU lane width; classifier output is padded to this
BT = 8         # batch tile (multiple of 8 sublanes)


# ----------------------------------------------------------------------------
# Fused kernel: conv backbone -> MetaBlock gating -> reducer -> classifier
# ----------------------------------------------------------------------------
def fused_metablock_kernel(patches_ref, meta_ref, wc_ref, bc_ref,
                           wf_ref, bf_ref, wg_ref, bg_ref,
                           w1_ref, b1_ref, w2_ref, b2_ref, out_ref):
    bt = meta_ref.shape[0]
    S2, V, N = w1_ref.shape

    # --- synthetic conv backbone: im2col matmul (bf16) + bias + ReLU (MXU) --
    feat = jnp.dot(patches_ref[...], wc_ref[...],
                   preferred_element_type=jnp.float32)          # (bt*S2, V)
    feat = jnp.maximum(feat + bc_ref[...], 0.0)

    # --- MetaBlock fb / gb: two lane-aligned dots (eval-BN folded wrapper-side)
    meta = meta_ref[...]                                        # (bt, U) bf16
    t1 = jnp.dot(meta, wf_ref[...],
                 preferred_element_type=jnp.float32) + bf_ref[...]   # (bt, V)
    t2 = jnp.dot(meta, wg_ref[...],
                 preferred_element_type=jnp.float32) + bg_ref[...]   # (bt, V)

    # --- gating: sigmoid(tanh(feat * t1) + t2), broadcast t1/t2 over S2 -----
    # sigmoid(x) = 0.5*tanh(0.5*x) + 0.5  -> one transcendental per element.
    feat3 = feat.reshape(bt, S2, V)              # sublane split: free view
    z = jnp.tanh(feat3 * t1[:, None, :]) + t2[:, None, :]
    gated = 0.5 * jnp.tanh(0.5 * z) + 0.5        # (bt, S2, V), f32

    # --- reducer block: contract (s, v) with no sublane->lane relayout ------
    # h[b, n] = sum_s gated[b, s, :] @ w1[s]   (w1 pre-shaped (S2, V, N))
    h = jnp.zeros((bt, N), jnp.float32)
    for s in range(S2):                          # static unroll
        h = h + jnp.dot(gated[:, s, :].astype(jnp.bfloat16), w1_ref[s],
                        preferred_element_type=jnp.float32)
    h = jnp.maximum(h + b1_ref[...], 0.0)        # Dropout = identity in eval

    # --- classifier into a lane-dense 128-wide output slab ------------------
    out_ref[...] = jnp.dot(h.astype(jnp.bfloat16), w2_ref[...],
                           preferred_element_type=jnp.float32) + b2_ref[...]


# ----------------------------------------------------------------------------
# Wrapper: im2col glue, batch padding, one pallas_call
# ----------------------------------------------------------------------------
@partial(jax.jit, static_argnames=("kh", "kw", "n_classes"))
def metablock_forward(meta_data, img, kp, *, kh, kw, n_classes):
    B, C, H, W = img.shape
    Ho, Wo = H // kh, W // kw
    S2 = Ho * Wo
    K = C * kh * kw
    V = kp["wc"].shape[1]
    U = meta_data.shape[1]
    N = kp["w1"].shape[2]

    # batch tiling: bt multiple of 8 sublanes; pad batch so grid has >= 2 points
    bt = BT
    B_pad = max(2 * bt, -(-B // bt) * bt)
    assert B_pad % bt == 0 and (bt * S2) % 8 == 0

    # im2col glue: NCHW -> (B*S2, K), rows ordered (b, ho, wo)
    patches = img.astype(jnp.float32).reshape(B, C, Ho, kh, Wo, kw)
    patches = patches.transpose(0, 2, 4, 1, 3, 5).reshape(B * S2, K)
    patches = jnp.pad(patches, ((0, (B_pad - B) * S2), (0, 0)))
    patches = patches.astype(jnp.bfloat16)
    meta_p = jnp.pad(meta_data.astype(jnp.float32), ((0, B_pad - B), (0, 0)))
    meta_p = meta_p.astype(jnp.bfloat16)

    grid = (B_pad // bt,)

    def full(shape):
        return pl.BlockSpec(shape, lambda *_: (0,) * len(shape))

    out_pad = pl.pallas_call(
        fused_metablock_kernel,
        out_shape=jax.ShapeDtypeStruct((B_pad, LANE), jnp.float32),
        grid=grid,
        in_specs=[
            pl.BlockSpec((bt * S2, K), lambda i: (i, 0)),   # patches (batch-tiled)
            pl.BlockSpec((bt, U), lambda i: (i, 0)),        # metadata (batch-tiled)
            full((K, V)),            # conv weight (bf16)
            full((1, V)),            # conv bias (f32)
            full((U, V)),            # fb weight, BN folded (bf16)
            full((1, V)),            # fb bias (f32)
            full((U, V)),            # gb weight, BN folded (bf16)
            full((1, V)),            # gb bias (f32)
            full((S2, V, N)),        # reducer weight, (S2, V, N) layout (bf16)
            full((1, N)),            # reducer bias (f32)
            full((N, LANE)),         # classifier weight, lane-padded (bf16)
            full((1, LANE)),         # classifier bias, lane-padded (f32)
        ],
        out_specs=pl.BlockSpec((bt, LANE), lambda i: (i, 0)),
        compiler_params=pltpu.CompilerParams(
            dimension_semantics=("parallel",),
            vmem_limit_bytes=32 * 1024 * 1024),
    )(patches, meta_p, kp["wc"], kp["bc"], kp["wf"], kp["bf"],
      kp["wg"], kp["bg"], kp["w1"], kp["b1"], kp["w2"], kp["b2"])

    return out_pad[:B, :n_classes]


# ----------------------------------------------------------------------------
# One-time wrapper-side parameter re-layout / constant folding / bf16 casting
# ----------------------------------------------------------------------------
def prep_kernel_params(p, *, S2):
    V, C, kh, kw = p["w_conv"].shape
    N = p["w1"].shape[1]
    n_classes = p["w2"].shape[1]

    def fold_bn(w, b, g, beta, m, var):
        s = g * jax.lax.rsqrt(var + EPS)                    # (1, V)
        return w * s, (b - m) * s + beta

    wf, bf = fold_bn(p["wf"], p["bf"], p["gf"], p["betf"], p["mf"], p["vf"])
    wg, bg = fold_bn(p["wg"], p["bg"], p["gg"], p["betg"], p["mg"], p["vg"])

    return {
        "wc": p["w_conv"].reshape(V, C * kh * kw).T.astype(jnp.bfloat16),  # (K, V)
        "bc": p["b_conv"].reshape(1, V),
        "wf": wf.astype(jnp.bfloat16), "bf": bf,
        "wg": wg.astype(jnp.bfloat16), "bg": bg,
        # torch flatten of x (B, V, S2) is (v, s)-major: row index v*S2 + s.
        # Kernel contracts per-s slabs of shape (V, N): reshape (V, S2, N) and
        # move s to the front -> (S2, V, N), so w1k[s, v, :] == w1[v*S2+s, :].
        "w1": p["w1"].reshape(V, S2, N).transpose(1, 0, 2).astype(jnp.bfloat16),
        "b1": p["b1"].reshape(1, N),
        # pad classifier to a 128-lane slab (zeros in the extra columns)
        "w2": jnp.pad(p["w2"], ((0, 0), (0, LANE - n_classes))).astype(jnp.bfloat16),
        "b2": jnp.pad(p["b2"].reshape(1, n_classes),
                      ((0, 0), (0, LANE - n_classes))),
    }


# ----------------------------------------------------------------------------
# Deterministic "torch-style" parameter construction
# ----------------------------------------------------------------------------
def make_params(key, *, C=3, V=32, kh=4, kw=4, U=8, S2=16,
                n_reducer_neurons=64, n_classes=3):
    ks = jax.random.split(key, 16)
    feat_size = V * S2
    return {
        # synthetic conv backbone (stands in for AlexNet features)
        "w_conv": jax.random.normal(ks[0], (V, C, kh, kw), jnp.float32) * 0.1,
        "b_conv": jax.random.normal(ks[1], (V,), jnp.float32) * 0.1,
        # MetaBlock fb: Linear(U, V) + BatchNorm1d(V)
        "wf": jax.random.normal(ks[2], (U, V), jnp.float32) * 0.2,
        "bf": jax.random.normal(ks[3], (1, V), jnp.float32) * 0.1,
        "gf": 1.0 + 0.05 * jax.random.normal(ks[4], (1, V), jnp.float32),
        "betf": 0.05 * jax.random.normal(ks[5], (1, V), jnp.float32),
        "mf": 0.1 * jax.random.normal(ks[6], (1, V), jnp.float32),
        "vf": jax.random.uniform(ks[7], (1, V), jnp.float32, 0.5, 1.5),
        # MetaBlock gb: Linear(U, V) + BatchNorm1d(V)
        "wg": jax.random.normal(ks[8], (U, V), jnp.float32) * 0.2,
        "bg": jax.random.normal(ks[9], (1, V), jnp.float32) * 0.1,
        "gg": 1.0 + 0.05 * jax.random.normal(ks[10], (1, V), jnp.float32),
        "betg": 0.05 * jax.random.normal(ks[11], (1, V), jnp.float32),
        "mg": 0.1 * jax.random.normal(ks[12], (1, V), jnp.float32),
        "vg": jax.random.uniform(ks[13], (1, V), jnp.float32, 0.5, 1.5),
        # reducer_block: Linear(feat_size, n_reducer_neurons)
        "w1": jax.random.normal(ks[14], (feat_size, n_reducer_neurons),
                                jnp.float32) * 0.05,
        "b1": jnp.zeros((n_reducer_neurons,), jnp.float32),
        # classifier: Linear(n_reducer_neurons, n_classes)
        "w2": jax.random.normal(ks[15], (n_reducer_neurons, n_classes),
                                jnp.float32) * 0.1,
        "b2": jnp.zeros((n_classes,), jnp.float32),
    }


# ----------------------------------------------------------------------------
# Pure-JAX reference in the torch module's exact ordering (for validation)
# ----------------------------------------------------------------------------
def reference_forward(meta, img, p):
    B = img.shape[0]
    V, _, kh, kw = p["w_conv"].shape
    x = jax.lax.conv_general_dilated(
        img.astype(jnp.float32), p["w_conv"], window_strides=(kh, kw),
        padding="VALID", dimension_numbers=("NCHW", "OIHW", "NCHW"))
    x = jnp.maximum(x + p["b_conv"].reshape(1, V, 1, 1), 0.0)
    S2 = x.shape[2] * x.shape[3]
    x = x.reshape(B, V, S2)                      # x.view(B, n_feat_map, S**2)

    def lin_bn(u, w, b, g, beta, m, var):
        t = u @ w + b
        return (t - m) * jax.lax.rsqrt(var + EPS) * g + beta

    meta = meta.astype(jnp.float32)
    t1 = lin_bn(meta, p["wf"], p["bf"], p["gf"], p["betf"], p["mf"], p["vf"])
    t2 = lin_bn(meta, p["wg"], p["bg"], p["gg"], p["betg"], p["mg"], p["vg"])
    gated = jax.nn.sigmoid(jnp.tanh(x * t1[:, :, None]) + t2[:, :, None])
    flat = gated.reshape(B, -1)                  # x.view(B, -1): (v, s)-major
    h = jnp.maximum(flat @ p["w1"] + p["b1"].reshape(1, -1), 0.0)
    return h @ p["w2"] + p["b2"].reshape(1, -1)


if __name__ == "__main__":
    key = jax.random.PRNGKey(0)
    k_img, k_meta, k_param = jax.random.split(key, 3)

    B, C, H, W = 4, 3, 16, 16          # img NCHW (PyTorch convention)
    U = 8                              # n_metadata
    V, kh, kw = 32, 4, 4               # synthetic backbone: n_feat_map, kernel
    S = H // kh                        # n_feat_map_size
    S2 = S * S
    n_reducer, n_classes = 64, 3

    img = jax.random.normal(k_img, (B, C, H, W), jnp.float32)
    meta = jax.random.normal(k_meta, (B, U), jnp.float32)

    raw_params = make_params(k_param, C=C, V=V, kh=kh, kw=kw, U=U, S2=S2,
                             n_reducer_neurons=n_reducer, n_classes=n_classes)
    kparams = prep_kernel_params(raw_params, S2=S2)

    logits = metablock_forward(meta, img, kparams,
                               kh=kh, kw=kw, n_classes=n_classes)
    jax.block_until_ready(logits)

    assert logits.shape == (B, n_classes), logits.shape
    assert bool(jnp.all(jnp.isfinite(logits)))

    # f32 reference; tolerance accounts for the bf16 MXU operands in the kernel
    ref = reference_forward(meta, img, raw_params)
    max_err = float(jnp.max(jnp.abs(logits - ref)))
    assert bool(jnp.allclose(logits, ref, rtol=5e-2, atol=5e-2)), max_err

    print("KERNEL_OK")
</pallas_src>

<mosaic_0001>
module attributes {stable_mosaic.version = 11 : i64} {
  func.func @fused_metablock_kernel(%arg0: i32, %arg1: memref<128x48xbf16, #tpu.memory_space<vmem>>, %arg2: memref<8x8xbf16, #tpu.memory_space<vmem>>, %arg3: memref<48x32xbf16, #tpu.memory_space<vmem>>, %arg4: memref<1x32xf32, #tpu.memory_space<vmem>>, %arg5: memref<8x32xbf16, #tpu.memory_space<vmem>>, %arg6: memref<1x32xf32, #tpu.memory_space<vmem>>, %arg7: memref<8x32xbf16, #tpu.memory_space<vmem>>, %arg8: memref<1x32xf32, #tpu.memory_space<vmem>>, %arg9: memref<16x32x64xbf16, #tpu.memory_space<vmem>>, %arg10: memref<1x64xf32, #tpu.memory_space<vmem>>, %arg11: memref<64x128xbf16, #tpu.memory_space<vmem>>, %arg12: memref<1x128xf32, #tpu.memory_space<vmem>>, %arg13: memref<8x128xf32, #tpu.memory_space<vmem>>) attributes {dimension_semantics = [#tpu.dimension_semantics<parallel>], iteration_bounds = array<i64: 2>, scalar_prefetch = 0 : i64, scratch_operands = 0 : i64, tpu.core_type = #tpu.core_type<tc>, window_params = [{transform_indices = @transform_0, window_bounds = array<i64: 128, 48>}, {transform_indices = @transform_1, window_bounds = array<i64: 8, 8>}, {pipeline_mode = #tpu.pipeline_mode<synchronous>, transform_indices = @transform_2, window_bounds = array<i64: 48, 32>}, {pipeline_mode = #tpu.pipeline_mode<synchronous>, transform_indices = @transform_3, window_bounds = array<i64: 1, 32>}, {pipeline_mode = #tpu.pipeline_mode<synchronous>, transform_indices = @transform_4, window_bounds = array<i64: 8, 32>}, {pipeline_mode = #tpu.pipeline_mode<synchronous>, transform_indices = @transform_5, window_bounds = array<i64: 1, 32>}, {pipeline_mode = #tpu.pipeline_mode<synchronous>, transform_indices = @transform_6, window_bounds = array<i64: 8, 32>}, {pipeline_mode = #tpu.pipeline_mode<synchronous>, transform_indices = @transform_7, window_bounds = array<i64: 1, 32>}, {pipeline_mode = #tpu.pipeline_mode<synchronous>, transform_indices = @transform_8, window_bounds = array<i64: 16, 32, 64>}, {pipeline_mode = #tpu.pipeline_mode<synchronous>, transform_indices = @transform_9, window_bounds = array<i64: 1, 64>}, {pipeline_mode = #tpu.pipeline_mode<synchronous>, transform_indices = @transform_10, window_bounds = array<i64: 64, 128>}, {pipeline_mode = #tpu.pipeline_mode<synchronous>, transform_indices = @transform_11, window_bounds = array<i64: 1, 128>}, {transform_indices = @transform_12, window_bounds = array<i64: 8, 128>}]} {
    %c0 = arith.constant 0 : index
    %c0_0 = arith.constant 0 : index
    %0 = vector.load %arg1[%c0, %c0_0] : memref<128x48xbf16, #tpu.memory_space<vmem>>, vector<128x48xbf16>
    %c0_1 = arith.constant 0 : index
    %c0_2 = arith.constant 0 : index
    %1 = vector.load %arg3[%c0_1, %c0_2] : memref<48x32xbf16, #tpu.memory_space<vmem>>, vector<48x32xbf16>
    %cst = arith.constant dense<0.000000e+00> : vector<128x32xf32>
    %2 = tpu.matmul %0, %1, %cst {dimension_numbers = #tpu.dot_dimension_numbers<[1], [0], [0], [1], [0, 0, 1, 1], [], []>} : vector<128x48xbf16>, vector<48x32xbf16>, vector<128x32xf32> -> vector<128x32xf32>
    %c0_3 = arith.constant 0 : index
    %c0_4 = arith.constant 0 : index
    %3 = vector.load %arg4[%c0_3, %c0_4] : memref<1x32xf32, #tpu.memory_space<vmem>>, vector<1x32xf32>
    %4 = vector.broadcast %3 : vector<1x32xf32> to vector<128x32xf32>
    %5 = arith.addf %2, %4 : vector<128x32xf32>
    %cst_5 = arith.constant 0.000000e+00 : f32
    %6 = vector.broadcast %cst_5 : f32 to vector<128x32xf32>
    %7 = arith.maximumf %5, %6 : vector<128x32xf32>
    %c0_6 = arith.constant 0 : index
    %c0_7 = arith.constant 0 : index
    %8 = vector.load %arg2[%c0_6, %c0_7] : memref<8x8xbf16, #tpu.memory_space<vmem>>, vector<8x8xbf16>
    %c0_8 = arith.constant 0 : index
    %c0_9 = arith.constant 0 : index
    %9 = vector.load %arg5[%c0_8, %c0_9] : memref<8x32xbf16, #tpu.memory_space<vmem>>, vector<8x32xbf16>
    %cst_10 = arith.constant dense<0.000000e+00> : vector<8x32xf32>
    %10 = tpu.matmul %8, %9, %cst_10 {dimension_numbers = #tpu.dot_dimension_numbers<[1], [0], [0], [1], [0, 0, 1, 1], [], []>} : vector<8x8xbf16>, vector<8x32xbf16>, vector<8x32xf32> -> vector<8x32xf32>
    %c0_11 = arith.constant 0 : index
    %c0_12 = arith.constant 0 : index
    %11 = vector.load %arg6[%c0_11, %c0_12] : memref<1x32xf32, #tpu.memory_space<vmem>>, vector<1x32xf32>
    %12 = vector.broadcast %11 : vector<1x32xf32> to vector<8x32xf32>
    %13 = arith.addf %10, %12 : vector<8x32xf32>
    %c0_13 = arith.constant 0 : index
    %c0_14 = arith.constant 0 : index
    %14 = vector.load %arg7[%c0_13, %c0_14] : memref<8x32xbf16, #tpu.memory_space<vmem>>, vector<8x32xbf16>
    %cst_15 = arith.constant dense<0.000000e+00> : vector<8x32xf32>
    %15 = tpu.matmul %8, %14, %cst_15 {dimension_numbers = #tpu.dot_dimension_numbers<[1], [0], [0], [1], [0, 0, 1, 1], [], []>} : vector<8x8xbf16>, vector<8x32xbf16>, vector<8x32xf32> -> vector<8x32xf32>
    %c0_16 = arith.constant 0 : index
    %c0_17 = arith.constant 0 : index
    %16 = vector.load %arg8[%c0_16, %c0_17] : memref<1x32xf32, #tpu.memory_space<vmem>>, vector<1x32xf32>
    %17 = vector.broadcast %16 : vector<1x32xf32> to vector<8x32xf32>
    %18 = arith.addf %15, %17 : vector<8x32xf32>
    %19 = vector.shape_cast %7 : vector<128x32xf32> to vector<8x16x32xf32>
    %20 = vector.shape_cast %13 : vector<8x32xf32> to vector<8x1x32xf32>
    %21 = vector.broadcast %20 : vector<8x1x32xf32> to vector<8x16x32xf32>
    %22 = arith.mulf %19, %21 : vector<8x16x32xf32>
    %23 = math.tanh %22 : vector<8x16x32xf32>
    %24 = vector.shape_cast %18 : vector<8x32xf32> to vector<8x1x32xf32>
    %25 = vector.broadcast %24 : vector<8x1x32xf32> to vector<8x16x32xf32>
    %26 = arith.addf %23, %25 : vector<8x16x32xf32>
    %cst_18 = arith.constant 5.000000e-01 : f32
    %27 = vector.broadcast %cst_18 : f32 to vector<8x16x32xf32>
    %28 = arith.mulf %27, %26 : vector<8x16x32xf32>
    %29 = math.tanh %28 : vector<8x16x32xf32>
    %cst_19 = arith.constant 5.000000e-01 : f32
    %30 = vector.broadcast %cst_19 : f32 to vector<8x16x32xf32>
    %31 = arith.mulf %30, %29 : vector<8x16x32xf32>
    %cst_20 = arith.constant 5.000000e-01 : f32
    %32 = vector.broadcast %cst_20 : f32 to vector<8x16x32xf32>
    %33 = arith.addf %31, %32 : vector<8x16x32xf32>
    %cst_21 = arith.constant 0.000000e+00 : f32
    %34 = vector.broadcast %cst_21 : f32 to vector<8x64xf32>
    %35 = vector.extract_strided_slice %33 {offsets = [0, 0, 0], sizes = [8, 1, 32], strides = [1, 1, 1]} : vector<8x16x32xf32> to vector<8x1x32xf32>
    %36 = vector.shape_cast %35 : vector<8x1x32xf32> to vector<8x32xf32>
    %37 = arith.truncf %36 : vector<8x32xf32> to vector<8x32xbf16>
    %c0_22 = arith.constant 0 : index
    %c0_23 = arith.constant 0 : index
    %c0_24 = arith.constant 0 : index
    %38 = vector.load %arg9[%c0_22, %c0_23, %c0_24] : memref<16x32x64xbf16, #tpu.memory_space<vmem>>, vector<1x32x64xbf16>
    %39 = vector.shape_cast %38 : vector<1x32x64xbf16> to vector<32x64xbf16>
    %cst_25 = arith.constant dense<0.000000e+00> : vector<8x64xf32>
    %40 = tpu.matmul %37, %39, %cst_25 {dimension_numbers = #tpu.dot_dimension_numbers<[1], [0], [0], [1], [0, 0, 1, 1], [], []>} : vector<8x32xbf16>, vector<32x64xbf16>, vector<8x64xf32> -> vector<8x64xf32>
    %41 = arith.addf %34, %40 : vector<8x64xf32>
    %42 = vector.extract_strided_slice %33 {offsets = [0, 1, 0], sizes = [8, 1, 32], strides = [1, 1, 1]} : vector<8x16x32xf32> to vector<8x1x32xf32>
    %43 = vector.shape_cast %42 : vector<8x1x32xf32> to vector<8x32xf32>
    %44 = arith.truncf %43 : vector<8x32xf32> to vector<8x32xbf16>
    %c1 = arith.constant 1 : index
    %c0_26 = arith.constant 0 : index
    %c0_27 = arith.constant 0 : index
    %45 = vector.load %arg9[%c1, %c0_26, %c0_27] : memref<16x32x64xbf16, #tpu.memory_space<vmem>>, vector<1x32x64xbf16>
    %46 = vector.shape_cast %45 : vector<1x32x64xbf16> to vector<32x64xbf16>
    %cst_28 = arith.constant dense<0.000000e+00> : vector<8x64xf32>
    %47 = tpu.matmul %44, %46, %cst_28 {dimension_numbers = #tpu.dot_dimension_numbers<[1], [0], [0], [1], [0, 0, 1, 1], [], []>} : vector<8x32xbf16>, vector<32x64xbf16>, vector<8x64xf32> -> vector<8x64xf32>
    %48 = arith.addf %41, %47 : vector<8x64xf32>
    %49 = vector.extract_strided_slice %33 {offsets = [0, 2, 0], sizes = [8, 1, 32], strides = [1, 1, 1]} : vector<8x16x32xf32> to vector<8x1x32xf32>
    %50 = vector.shape_cast %49 : vector<8x1x32xf32> to vector<8x32xf32>
    %51 = arith.truncf %50 : vector<8x32xf32> to vector<8x32xbf16>
    %c2 = arith.constant 2 : index
    %c0_29 = arith.constant 0 : index
    %c0_30 = arith.constant 0 : index
    %52 = vector.load %arg9[%c2, %c0_29, %c0_30] : memref<16x32x64xbf16, #tpu.memory_space<vmem>>, vector<1x32x64xbf16>
    %53 = vector.shape_cast %52 : vector<1x32x64xbf16> to vector<32x64xbf16>
    %cst_31 = arith.constant dense<0.000000e+00> : vector<8x64xf32>
    %54 = tpu.matmul %51, %53, %cst_31 {dimension_numbers = #tpu.dot_dimension_numbers<[1], [0], [0], [1], [0, 0, 1, 1], [], []>} : vector<8x32xbf16>, vector<32x64xbf16>, vector<8x64xf32> -> vector<8x64xf32>
    %55 = arith.addf %48, %54 : vector<8x64xf32>
    %56 = vector.extract_strided_slice %33 {offsets = [0, 3, 0], sizes = [8, 1, 32], strides = [1, 1, 1]} : vector<8x16x32xf32> to vector<8x1x32xf32>
    %57 = vector.shape_cast %56 : vector<8x1x32xf32> to vector<8x32xf32>
    %58 = arith.truncf %57 : vector<8x32xf32> to vector<8x32xbf16>
    %c3 = arith.constant 3 : index
    %c0_32 = arith.constant 0 : index
    %c0_33 = arith.constant 0 : index
    %59 = vector.load %arg9[%c3, %c0_32, %c0_33] : memref<16x32x64xbf16, #tpu.memory_space<vmem>>, vector<1x32x64xbf16>
    %60 = vector.shape_cast %59 : vector<1x32x64xbf16> to vector<32x64xbf16>
    %cst_34 = arith.constant dense<0.000000e+00> : vector<8x64xf32>
    %61 = tpu.matmul %58, %60, %cst_34 {dimension_numbers = #tpu.dot_dimension_numbers<[1], [0], [0], [1], [0, 0, 1, 1], [], []>} : vector<8x32xbf16>, vector<32x64xbf16>, vector<8x64xf32> -> vector<8x64xf32>
    %62 = arith.addf %55, %61 : vector<8x64xf32>
    %63 = vector.extract_strided_slice %33 {offsets = [0, 4, 0], sizes = [8, 1, 32], strides = [1, 1, 1]} : vector<8x16x32xf32> to vector<8x1x32xf32>
    %64 = vector.shape_cast %63 : vector<8x1x32xf32> to vector<8x32xf32>
    %65 = arith.truncf %64 : vector<8x32xf32> to vector<8x32xbf16>
    %c4 = arith.constant 4 : index
    %c0_35 = arith.constant 0 : index
    %c0_36 = arith.constant 0 : index
    %66 = vector.load %arg9[%c4, %c0_35, %c0_36] : memref<16x32x64xbf16, #tpu.memory_space<vmem>>, vector<1x32x64xbf16>
    %67 = vector.shape_cast %66 : vector<1x32x64xbf16> to vector<32x64xbf16>
    %cst_37 = arith.constant dense<0.000000e+00> : vector<8x64xf32>
    %68 = tpu.matmul %65, %67, %cst_37 {dimension_numbers = #tpu.dot_dimension_numbers<[1], [0], [0], [1], [0, 0, 1, 1], [], []>} : vector<8x32xbf16>, vector<32x64xbf16>, vector<8x64xf32> -> vector<8x64xf32>
    %69 = arith.addf %62, %68 : vector<8x64xf32>
    %70 = vector.extract_strided_slice %33 {offsets = [0, 5, 0], sizes = [8, 1, 32], strides = [1, 1, 1]} : vector<8x16x32xf32> to vector<8x1x32xf32>
    %71 = vector.shape_cast %70 : vector<8x1x32xf32> to vector<8x32xf32>
    %72 = arith.truncf %71 : vector<8x32xf32> to vector<8x32xbf16>
    %c5 = arith.constant 5 : index
    %c0_38 = arith.constant 0 : index
    %c0_39 = arith.constant 0 : index
    %73 = vector.load %arg9[%c5, %c0_38, %c0_39] : memref<16x32x64xbf16, #tpu.memory_space<vmem>>, vector<1x32x64xbf16>
    %74 = vector.shape_cast %73 : vector<1x32x64xbf16> to vector<32x64xbf16>
    %cst_40 = arith.constant dense<0.000000e+00> : vector<8x64xf32>
    %75 = tpu.matmul %72, %74, %cst_40 {dimension_numbers = #tpu.dot_dimension_numbers<[1], [0], [0], [1], [0, 0, 1, 1], [], []>} : vector<8x32xbf16>, vector<32x64xbf16>, vector<8x64xf32> -> vector<8x64xf32>
    %76 = arith.addf %69, %75 : vector<8x64xf32>
    %77 = vector.extract_strided_slice %33 {offsets = [0, 6, 0], sizes = [8, 1, 32], strides = [1, 1, 1]} : vector<8x16x32xf32> to vector<8x1x32xf32>
    %78 = vector.shape_cast %77 : vector<8x1x32xf32> to vector<8x32xf32>
    %79 = arith.truncf %78 : vector<8x32xf32> to vector<8x32xbf16>
    %c6 = arith.constant 6 : index
    %c0_41 = arith.constant 0 : index
    %c0_42 = arith.constant 0 : index
    %80 = vector.load %arg9[%c6, %c0_41, %c0_42] : memref<16x32x64xbf16, #tpu.memory_space<vmem>>, vector<1x32x64xbf16>
    %81 = vector.shape_cast %80 : vector<1x32x64xbf16> to vector<32x64xbf16>
    %cst_43 = arith.constant dense<0.000000e+00> : vector<8x64xf32>
    %82 = tpu.matmul %79, %81, %cst_43 {dimension_numbers = #tpu.dot_dimension_numbers<[1], [0], [0], [1], [0, 0, 1, 1], [], []>} : vector<8x32xbf16>, vector<32x64xbf16>, vector<8x64xf32> -> vector<8x64xf32>
    %83 = arith.addf %76, %82 : vector<8x64xf32>
    %84 = vector.extract_strided_slice %33 {offsets = [0, 7, 0], sizes = [8, 1, 32], strides = [1, 1, 1]} : vector<8x16x32xf32> to vector<8x1x32xf32>
    %85 = vector.shape_cast %84 : vector<8x1x32xf32> to vector<8x32xf32>
    %86 = arith.truncf %85 : vector<8x32xf32> to vector<8x32xbf16>
    %c7 = arith.constant 7 : index
    %c0_44 = arith.constant 0 : index
    %c0_45 = arith.constant 0 : index
    %87 = vector.load %arg9[%c7, %c0_44, %c0_45] : memref<16x32x64xbf16, #tpu.memory_space<vmem>>, vector<1x32x64xbf16>
    %88 = vector.shape_cast %87 : vector<1x32x64xbf16> to vector<32x64xbf16>
    %cst_46 = arith.constant dense<0.000000e+00> : vector<8x64xf32>
    %89 = tpu.matmul %86, %88, %cst_46 {dimension_numbers = #tpu.dot_dimension_numbers<[1], [0], [0], [1], [0, 0, 1, 1], [], []>} : vector<8x32xbf16>, vector<32x64xbf16>, vector<8x64xf32> -> vector<8x64xf32>
    %90 = arith.addf %83, %89 : vector<8x64xf32>
    %91 = vector.extract_strided_slice %33 {offsets = [0, 8, 0], sizes = [8, 1, 32], strides = [1, 1, 1]} : vector<8x16x32xf32> to vector<8x1x32xf32>
    %92 = vector.shape_cast %91 : vector<8x1x32xf32> to vector<8x32xf32>
    %93 = arith.truncf %92 : vector<8x32xf32> to vector<8x32xbf16>
    %c8 = arith.constant 8 : index
    %c0_47 = arith.constant 0 : index
    %c0_48 = arith.constant 0 : index
    %94 = vector.load %arg9[%c8, %c0_47, %c0_48] : memref<16x32x64xbf16, #tpu.memory_space<vmem>>, vector<1x32x64xbf16>
    %95 = vector.shape_cast %94 : vector<1x32x64xbf16> to vector<32x64xbf16>
    %cst_49 = arith.constant dense<0.000000e+00> : vector<8x64xf32>
    %96 = tpu.matmul %93, %95, %cst_49 {dimension_numbers = #tpu.dot_dimension_numbers<[1], [0], [0], [1], [0, 0, 1, 1], [], []>} : vector<8x32xbf16>, vector<32x64xbf16>, vector<8x64xf32> -> vector<8x64xf32>
    %97 = arith.addf %90, %96 : vector<8x64xf32>
    %98 = vector.extract_strided_slice %33 {offsets = [0, 9, 0], sizes = [8, 1, 32], strides = [1, 1, 1]} : vector<8x16x32xf32> to vector<8x1x32xf32>
    %99 = vector.shape_cast %98 : vector<8x1x32xf32> to vector<8x32xf32>
    %100 = arith.truncf %99 : vector<8x32xf32> to vector<8x32xbf16>
    %c9 = arith.constant 9 : index
    %c0_50 = arith.constant 0 : index
    %c0_51 = arith.constant 0 : index
    %101 = vector.load %arg9[%c9, %c0_50, %c0_51] : memref<16x32x64xbf16, #tpu.memory_space<vmem>>, vector<1x32x64xbf16>
    %102 = vector.shape_cast %101 : vector<1x32x64xbf16> to vector<32x64xbf16>
    %cst_52 = arith.constant dense<0.000000e+00> : vector<8x64xf32>
    %103 = tpu.matmul %100, %102, %cst_52 {dimension_numbers = #tpu.dot_dimension_numbers<[1], [0], [0], [1], [0, 0, 1, 1], [], []>} : vector<8x32xbf16>, vector<32x64xbf16>, vector<8x64xf32> -> vector<8x64xf32>
    %104 = arith.addf %97, %103 : vector<8x64xf32>
    %105 = vector.extract_strided_slice %33 {offsets = [0, 10, 0], sizes = [8, 1, 32], strides = [1, 1, 1]} : vector<8x16x32xf32> to vector<8x1x32xf32>
    %106 = vector.shape_cast %105 : vector<8x1x32xf32> to vector<8x32xf32>
    %107 = arith.truncf %106 : vector<8x32xf32> to vector<8x32xbf16>
    %c10 = arith.constant 10 : index
    %c0_53 = arith.constant 0 : index
    %c0_54 = arith.constant 0 : index
    %108 = vector.load %arg9[%c10, %c0_53, %c0_54] : memref<16x32x64xbf16, #tpu.memory_space<vmem>>, vector<1x32x64xbf16>
    %109 = vector.shape_cast %108 : vector<1x32x64xbf16> to vector<32x64xbf16>
    %cst_55 = arith.constant dense<0.000000e+00> : vector<8x64xf32>
    %110 = tpu.matmul %107, %109, %cst_55 {dimension_numbers = #tpu.dot_dimension_numbers<[1], [0], [0], [1], [0, 0, 1, 1], [], []>} : vector<8x32xbf16>, vector<32x64xbf16>, vector<8x64xf32> -> vector<8x64xf32>
    %111 = arith.addf %104, %110 : vector<8x64xf32>
    %112 = vector.extract_strided_slice %33 {offsets = [0, 11, 0], sizes = [8, 1, 32], strides = [1, 1, 1]} : vector<8x16x32xf32> to vector<8x1x32xf32>
    %113 = vector.shape_cast %112 : vector<8x1x32xf32> to vector<8x32xf32>
    %114 = arith.truncf %113 : vector<8x32xf32> to vector<8x32xbf16>
    %c11 = arith.constant 11 : index
    %c0_56 = arith.constant 0 : index
    %c0_57 = arith.constant 0 : index
    %115 = vector.load %arg9[%c11, %c0_56, %c0_57] : memref<16x32x64xbf16, #tpu.memory_space<vmem>>, vector<1x32x64xbf16>
    %116 = vector.shape_cast %115 : vector<1x32x64xbf16> to vector<32x64xbf16>
    %cst_58 = arith.constant dense<0.000000e+00> : vector<8x64xf32>
    %117 = tpu.matmul %114, %116, %cst_58 {dimension_numbers = #tpu.dot_dimension_numbers<[1], [0], [0], [1], [0, 0, 1, 1], [], []>} : vector<8x32xbf16>, vector<32x64xbf16>, vector<8x64xf32> -> vector<8x64xf32>
    %118 = arith.addf %111, %117 : vector<8x64xf32>
    %119 = vector.extract_strided_slice %33 {offsets = [0, 12, 0], sizes = [8, 1, 32], strides = [1, 1, 1]} : vector<8x16x32xf32> to vector<8x1x32xf32>
    %120 = vector.shape_cast %119 : vector<8x1x32xf32> to vector<8x32xf32>
    %121 = arith.truncf %120 : vector<8x32xf32> to vector<8x32xbf16>
    %c12 = arith.constant 12 : index
    %c0_59 = arith.constant 0 : index
    %c0_60 = arith.constant 0 : index
    %122 = vector.load %arg9[%c12, %c0_59, %c0_60] : memref<16x32x64xbf16, #tpu.memory_space<vmem>>, vector<1x32x64xbf16>
    %123 = vector.shape_cast %122 : vector<1x32x64xbf16> to vector<32x64xbf16>
    %cst_61 = arith.constant dense<0.000000e+00> : vector<8x64xf32>
    %124 = tpu.matmul %121, %123, %cst_61 {dimension_numbers = #tpu.dot_dimension_numbers<[1], [0], [0], [1], [0, 0, 1, 1], [], []>} : vector<8x32xbf16>, vector<32x64xbf16>, vector<8x64xf32> -> vector<8x64xf32>
    %125 = arith.addf %118, %124 : vector<8x64xf32>
    %126 = vector.extract_strided_slice %33 {offsets = [0, 13, 0], sizes = [8, 1, 32], strides = [1, 1, 1]} : vector<8x16x32xf32> to vector<8x1x32xf32>
    %127 = vector.shape_cast %126 : vector<8x1x32xf32> to vector<8x32xf32>
    %128 = arith.truncf %127 : vector<8x32xf32> to vector<8x32xbf16>
    %c13 = arith.constant 13 : index
    %c0_62 = arith.constant 0 : index
    %c0_63 = arith.constant 0 : index
    %129 = vector.load %arg9[%c13, %c0_62, %c0_63] : memref<16x32x64xbf16, #tpu.memory_space<vmem>>, vector<1x32x64xbf16>
    %130 = vector.shape_cast %129 : vector<1x32x64xbf16> to vector<32x64xbf16>
    %cst_64 = arith.constant dense<0.000000e+00> : vector<8x64xf32>
    %131 = tpu.matmul %128, %130, %cst_64 {dimension_numbers = #tpu.dot_dimension_numbers<[1], [0], [0], [1], [0, 0, 1, 1], [], []>} : vector<8x32xbf16>, vector<32x64xbf16>, vector<8x64xf32> -> vector<8x64xf32>
    %132 = arith.addf %125, %131 : vector<8x64xf32>
    %133 = vector.extract_strided_slice %33 {offsets = [0, 14, 0], sizes = [8, 1, 32], strides = [1, 1, 1]} : vector<8x16x32xf32> to vector<8x1x32xf32>
    %134 = vector.shape_cast %133 : vector<8x1x32xf32> to vector<8x32xf32>
    %135 = arith.truncf %134 : vector<8x32xf32> to vector<8x32xbf16>
    %c14 = arith.constant 14 : index
    %c0_65 = arith.constant 0 : index
    %c0_66 = arith.constant 0 : index
    %136 = vector.load %arg9[%c14, %c0_65, %c0_66] : memref<16x32x64xbf16, #tpu.memory_space<vmem>>, vector<1x32x64xbf16>
    %137 = vector.shape_cast %136 : vector<1x32x64xbf16> to vector<32x64xbf16>
    %cst_67 = arith.constant dense<0.000000e+00> : vector<8x64xf32>
    %138 = tpu.matmul %135, %137, %cst_67 {dimension_numbers = #tpu.dot_dimension_numbers<[1], [0], [0], [1], [0, 0, 1, 1], [], []>} : vector<8x32xbf16>, vector<32x64xbf16>, vector<8x64xf32> -> vector<8x64xf32>
    %139 = arith.addf %132, %138 : vector<8x64xf32>
    %140 = vector.extract_strided_slice %33 {offsets = [0, 15, 0], sizes = [8, 1, 32], strides = [1, 1, 1]} : vector<8x16x32xf32> to vector<8x1x32xf32>
    %141 = vector.shape_cast %140 : vector<8x1x32xf32> to vector<8x32xf32>
    %142 = arith.truncf %141 : vector<8x32xf32> to vector<8x32xbf16>
    %c15 = arith.constant 15 : index
    %c0_68 = arith.constant 0 : index
    %c0_69 = arith.constant 0 : index
    %143 = vector.load %arg9[%c15, %c0_68, %c0_69] : memref<16x32x64xbf16, #tpu.memory_space<vmem>>, vector<1x32x64xbf16>
    %144 = vector.shape_cast %143 : vector<1x32x64xbf16> to vector<32x64xbf16>
    %cst_70 = arith.constant dense<0.000000e+00> : vector<8x64xf32>
    %145 = tpu.matmul %142, %144, %cst_70 {dimension_numbers = #tpu.dot_dimension_numbers<[1], [0], [0], [1], [0, 0, 1, 1], [], []>} : vector<8x32xbf16>, vector<32x64xbf16>, vector<8x64xf32> -> vector<8x64xf32>
    %146 = arith.addf %139, %145 : vector<8x64xf32>
    %c0_71 = arith.constant 0 : index
    %c0_72 = arith.constant 0 : index
    %147 = vector.load %arg10[%c0_71, %c0_72] : memref<1x64xf32, #tpu.memory_space<vmem>>, vector<1x64xf32>
    %148 = vector.broadcast %147 : vector<1x64xf32> to vector<8x64xf32>
    %149 = arith.addf %146, %148 : vector<8x64xf32>
    %cst_73 = arith.constant 0.000000e+00 : f32
    %150 = vector.broadcast %cst_73 : f32 to vector<8x64xf32>
    %151 = arith.maximumf %149, %150 : vector<8x64xf32>
    %152 = arith.truncf %151 : vector<8x64xf32> to vector<8x64xbf16>
    %c0_74 = arith.constant 0 : index
    %c0_75 = arith.constant 0 : index
    %153 = vector.load %arg11[%c0_74, %c0_75] : memref<64x128xbf16, #tpu.memory_space<vmem>>, vector<64x128xbf16>
    %cst_76 = arith.constant dense<0.000000e+00> : vector<8x128xf32>
    %154 = tpu.matmul %152, %153, %cst_76 {dimension_numbers = #tpu.dot_dimension_numbers<[1], [0], [0], [1], [0, 0, 1, 1], [], []>} : vector<8x64xbf16>, vector<64x128xbf16>, vector<8x128xf32> -> vector<8x128xf32>
    %c0_77 = arith.constant 0 : index
    %c0_78 = arith.constant 0 : index
    %155 = vector.load %arg12[%c0_77, %c0_78] : memref<1x128xf32, #tpu.memory_space<vmem>>, vector<1x128xf32>
    %156 = vector.broadcast %155 : vector<1x128xf32> to vector<8x128xf32>
    %157 = arith.addf %154, %156 : vector<8x128xf32>
    %c0_79 = arith.constant 0 : index
    %c0_80 = arith.constant 0 : index
    %158 = vector.load %arg13[%c0_79, %c0_80] : memref<8x128xf32, #tpu.memory_space<vmem>>, vector<8x128xf32>
    tpu.vector_store %arg13[%c0_79, %c0_80], %157 {strides = array<i32>} : memref<8x128xf32, #tpu.memory_space<vmem>>, vector<8x128xf32>,
    return
  }
  func.func @transform_0(%arg0: i32) -> (i32, i32) {
    %c0_i32 = arith.constant 0 : i32
    %c0_i32_0 = arith.constant 0 : i32
    return %arg0, %c0_i32 : i32, i32
  }
  func.func @transform_1(%arg0: i32) -> (i32, i32) {
    %c0_i32 = arith.constant 0 : i32
    %c0_i32_0 = arith.constant 0 : i32
    return %arg0, %c0_i32 : i32, i32
  }
  func.func @transform_2(%arg0: i32) -> (i32, i32) {
    %c0_i32 = arith.constant 0 : i32
    %c0_i32_0 = arith.constant 0 : i32
    %c0_i32_1 = arith.constant 0 : i32
    return %c0_i32, %c0_i32_0 : i32, i32
  }
  func.func @transform_3(%arg0: i32) -> (i32, i32) {
    %c0_i32 = arith.constant 0 : i32
    %c0_i32_0 = arith.constant 0 : i32
    %c0_i32_1 = arith.constant 0 : i32
    return %c0_i32, %c0_i32_0 : i32, i32
  }
  func.func @transform_4(%arg0: i32) -> (i32, i32) {
    %c0_i32 = arith.constant 0 : i32
    %c0_i32_0 = arith.constant 0 : i32
    %c0_i32_1 = arith.constant 0 : i32
    return %c0_i32, %c0_i32_0 : i32, i32
  }
  func.func @transform_5(%arg0: i32) -> (i32, i32) {
    %c0_i32 = arith.constant 0 : i32
    %c0_i32_0 = arith.constant 0 : i32
    %c0_i32_1 = arith.constant 0 : i32
    return %c0_i32, %c0_i32_0 : i32, i32
  }
  func.func @transform_6(%arg0: i32) -> (i32, i32) {
    %c0_i32 = arith.constant 0 : i32
    %c0_i32_0 = arith.constant 0 : i32
    %c0_i32_1 = arith.constant 0 : i32
    return %c0_i32, %c0_i32_0 : i32, i32
  }
  func.func @transform_7(%arg0: i32) -> (i32, i32) {
    %c0_i32 = arith.constant 0 : i32
    %c0_i32_0 = arith.constant 0 : i32
    %c0_i32_1 = arith.constant 0 : i32
    return %c0_i32, %c0_i32_0 : i32, i32
  }
  func.func @transform_8(%arg0: i32) -> (i32, i32, i32) {
    %c0_i32 = arith.constant 0 : i32
    %c0_i32_0 = arith.constant 0 : i32
    %c0_i32_1 = arith.constant 0 : i32
    %c0_i32_2 = arith.constant 0 : i32
    return %c0_i32, %c0_i32_0, %c0_i32_1 : i32, i32, i32
  }
  func.func @transform_9(%arg0: i32) -> (i32, i32) {
    %c0_i32 = arith.constant 0 : i32
    %c0_i32_0 = arith.constant 0 : i32
    %c0_i32_1 = arith.constant 0 : i32
    return %c0_i32, %c0_i32_0 : i32, i32
  }
  func.func @transform_10(%arg0: i32) -> (i32, i32) {
    %c0_i32 = arith.constant 0 : i32
    %c0_i32_0 = arith.constant 0 : i32
    %c0_i32_1 = arith.constant 0 : i32
    return %c0_i32, %c0_i32_0 : i32, i32
  }
  func.func @transform_11(%arg0: i32) -> (i32, i32) {
    %c0_i32 = arith.constant 0 : i32
    %c0_i32_0 = arith.constant 0 : i32
    %c0_i32_1 = arith.constant 0 : i32
    return %c0_i32, %c0_i32_0 : i32, i32
  }
  func.func @transform_12(%arg0: i32) -> (i32, i32) {
    %c0_i32 = arith.constant 0 : i32
    %c0_i32_0 = arith.constant 0 : i32
    return %arg0, %c0_i32 : i32, i32
  }
}

</mosaic_0001>

<bundles_post_ra>
// kernel: metablock_forward.1
= control target key start
LH: loop header
LB: loop body
LE: loop exit
PB: predicated region body
PF: predicated region fallthrough
CT: control target
= control target key end

     0   :  { %s2263_s21 = smov 0   ;;  %s2864_s0 = inlined_call_operand.vmem [shape: bf16[256,48], index: 0, kind: input, shape index: {}]   ;;  %s2865_s1 = inlined_call_operand.vmem [shape: bf16[16,8], index: 1, kind: input, shape index: {}]   ;;  %s2866_s2 = inlined_call_operand.vmem [shape: bf16[48,32], index: 2, kind: input, shape index: {}]   ;;  %s2867_s3 = inlined_call_operand.vmem [shape: f32[1,32], index: 3, kind: input, shape index: {}]   ;;  %s2868_s4 = inlined_call_operand.vmem [shape: bf16[8,32], index: 4, kind: input, shape index: {}]   ;;  %s2869_s5 = inlined_call_operand.vmem [shape: f32[1,32], index: 5, kind: input, shape index: {}]   ;;  %s2870_s6 = inlined_call_operand.vmem [shape: bf16[8,32], index: 6, kind: input, shape index: {}]   ;;  %s2871_s7 = inlined_call_operand.vmem [shape: f32[1,32], index: 7, kind: input, shape index: {}]   ;;  %s2872_s8 = inlined_call_operand.vmem [shape: bf16[16,32,64], index: 8, kind: input, shape index: {}]   ;;  %s2873_s9 = inlined_call_operand.vmem [shape: f32[1,64], index: 9, kind: input, shape index: {}]   ;;  %s2874_s10 = inlined_call_operand.vmem [shape: bf16[64,128], index: 10, kind: input, shape index: {}]   ;;  %s2875_s11 = inlined_call_operand.vmem [shape: f32[1,128], index: 11, kind: input, shape index: {}]   ;;  %s2876_s12 = inlined_call_operand.vmem [shape: f32[16,128], index: 12, kind: output, shape index: {}]  }
   0x1 LB: > { %s1777_s22 = sadd.s32 4294967295, %s2196_s21   ;;  %p1781_p0 = scmp.ge.s32.totalorder %s2196_s21, 1  ;;  %s2196_s21 = sphi %s2263_s21, %s22_s21  }
   0x2   : > { %p372_p1 = scmp.lt.s32.totalorder %s2196_s21, 3 }
   0x4   : > { %p373_p2 = pnand %p1781_p0, %p372_p1 }
   0x5   : > { %s1782_s25 = sshll.u32 (!%p373_p2), %s1777_s22, 4  ;;  %p423_p4 = scmp.lt.s32.totalorder (!%p373_p2), %s1777_s22, 1 }
   0x6   : > { %376 = sbr.rel (%p373_p2) target bundleno = 637 (0x27d), region = 68  ;;  %p418_p3 = scmp.lt.s32.totalorder (!%p373_p2), %s1782_s25, 31 }
   0xb   : > { %v2073_v0 = vld [vmem:[%s2866_s2 + $0x10] sm:$0xff]  ;;  %vm616_vm0 = vcmask 1043456   ;;  %v607_v1 = vld [vmem:[%s2868_s4] sm:$0xf]  ;;  %v2072_v2 = vld [vmem:[%s2866_s2 + $0x8] sm:$0xff]  ;;  %s2878_s25 = smov (!%p418_p3, %s1782_s25), 31 }
   0xc   : > { %546 = vmatpush.bf16.msra.mxu0 %v2073_v0  ;;  %2110 = vmatpush.bf16.msra.mxu2 %v2073_v0  ;;  %v618_v3 = vsel %vm616_vm0, %v607_v1, 0  ;;  %s2880_s22 = smov (!%p423_p4, %s1777_s22), 1  ;;  %s1783_s30 = sshll.u32 %s2878_s25, 2  ;;  %v633_v4 = vld [vmem:[%s2870_s6] sm:$0xf]  ;;  %vm612_vm1 = vcmask 64512  }
   0xd   : > { %627 = vmatpush.bf16.msra.mxu1 %v618_v3  ;;  %v2071_v5 = vld [vmem:[%s2866_s2] sm:$0xff]  ;;  %s421_s19 = scalar_lea.vmem %s2864_s0, %s1783_s30  ;;  %s1784_s20 = sshll.u32 %s2880_s22, 2  ;;  %v639_v7 = vsel %vm616_vm0, %v633_v4, 0  ;;  %vm516_vm2 = vcmask 392192   ;;  %vm848_vm3 = vcmask 1041409   ;;  %vm851_vm4 = vcmask 1042434  }
   0xe   : > { %s426_s25 = scalar_lea.vmem %s2865_s1, %s1784_s20  ;;  %v2063_v8 = vld [vmem:[%s421_s19] sm:$0xff]  ;;  %v2070_v9 = vld [vmem:[%s421_s19 + $0x38] sm:$0xff]  ;;  %v2064_v10 = vld [vmem:[%s421_s19 + $0x8] sm:$0xff]  ;;  %vm854_vm5 = vcmask 1043459   ;;  %vm857_vm6 = vcmask 1044484   ;;  %vm860_vm7 = vcmask 1045509  }
   0xf   : > { %v606_v6 = vld [vmem:[%s426_s25] sm:$0xf]  ;;  %v2065_v11 = vld [vmem:[%s421_s19 + $0x10] sm:$0xff]  ;;  %v2066_v12 = vld [vmem:[%s421_s19 + $0x18] sm:$0xff]  ;;  %vm863_vm8 = vcmask 1046534   ;;  %vm866_vm9 = vcmask 1047559  }
  0x10   : > { %547 = vmatpush.bf16.msra.mxu0 %v2072_v2  ;;  %2111 = vmatpush.bf16.msra.mxu2 %v2072_v2  ;;  %v2067_v13 = vld [vmem:[%s421_s19 + $0x20] sm:$0xff]  ;;  %v2068_v14 = vld [vmem:[%s421_s19 + $0x28] sm:$0xff]  ;;  %v2069_v15 = vld [vmem:[%s421_s19 + $0x30] sm:$0xff]  ;;  %vm881_vm10 = vcmask 261120   ;;  %vm1694_vm11 = vcmask 523264   ;;  %s1785_s26 = sshll.u32 %s2880_s22, 3 }
  0x11   : > { %1838 = vmatmul.msk.bf16.vlgmr.msra.gmra.mxu1 %vm612_vm1, %v606_v6  ;;  %v2122_v16 = vld [vmem:[%s2869_s5] ss:$0 sm:$0xff]  ;;  %s430_s13 = scalar_lea.vmem %s2876_s12, %s1785_s26 }
  0x12   : > { %v2311_v18 = vld [vmem:[%s2867_s3] ss:$0 sm:$0xff] }
  0x13   : > { %v2123_v45 = vld [vmem:[%s2871_s7] ss:$0 sm:$0xff] }
  0x14   : > { %548 = vmatpush.bf16.msra.mxu0 %v2071_v5  ;;  %2112 = vmatpush.bf16.msra.mxu2 %v2071_v5 }
  0x17   : > { %1830 = vmatmul.msk.bf16.vlgmr.msra.gmra.mxu0 %vm516_vm2, %v2063_v8  ;;  %1837 = vmatmul.msk.bf16.vlgmr.msra.gmra.mxu2 %vm516_vm2, %v2070_v9 }
  0x18   : > { %648 = vmatpush.bf16.msrb.mxu2 %v639_v7 }
  0x27   : > { %1831 = vmatmul.msk.bf16.gmra.mxu0 %vm516_vm2, %v2064_v10  ;;  %1839 = vmatmul.msk.bf16.vlgmr.msrb.gmra.mxu2 %vm612_vm1, %v606_v6 }
  0x37   : > { %1832 = vmatmul.msk.bf16.gmra.mxu0 %vm516_vm2, %v2065_v11 }
  0x47   : > { %1833 = vmatmul.msk.bf16.gmra.mxu0 %vm516_vm2, %v2066_v12 }
  0x57   : > { %1834 = vmatmul.msk.bf16.gmra.mxu0 %vm516_vm2, %v2067_v13 }
  0x67   : > { %1835 = vmatmul.msk.bf16.gmra.mxu0 %vm516_vm2, %v2068_v14 }
  0x77   : > { %1836 = vmatmul.msk.bf16.gmra.mxu0 %vm516_vm2, %v2069_v15 }
  0x8e   : > { %v629_v17 = vpop.f32.mrf.mxu1 }
  0x8f   : > { %v2313_v19 = vadd.f32 %v2122_v16, %v629_v17 }
  0x91   : > { %v662_v22 = vperm.slane %v2313_v19, 0  ;;  %v661_v24 = vrot.slane %v2313_v19, 7  ;;  %v655_v36 = vrot.slane %v2313_v19, 1  ;;  %v656_v63 = vrot.slane %v2313_v19, 2 }
  0x93   : > { %v669_v29 = vperm.slane %v661_v24, 0  ;;  %v663_v42 = vperm.slane %v655_v36, 0  ;;  %v664_v11 = vperm.slane %v656_v63, 0 }
  0x94   : > { %v550_v20 = vpop.f32.mrf.mxu0 }
  0x95   : > { %v551_v21 = vadd.f32 %v2311_v18, %v550_v20 }
  0x96   : > { %v631_v25 = vpop.f32.mrf.mxu1 }
  0x97   : > { %v590_v23 = vmax.f32 %v551_v21, 0.0 }
  0x99   : > { %v678_v26 = vmul.f32 %v662_v22, %v590_v23 }
  0x9a   : > { %v585_v27 = vpop.f32.mrf.mxu2 }
  0x9b   : > { %v586_v28 = vadd.f32 %v2311_v18, %v585_v27  ;;  %2126 = vtanh.f32 %v678_v26 }
  0x9c   : > { %v552_v30 = vpop.f32.mrf.mxu0 }
  0x9d   : > { %v604_v31 = vmax.f32 %v586_v28, 0.0  ;;  %v553_v32 = vadd.f32 %v2311_v18, %v552_v30 }
  0x9f   : > { %v692_v33 = vmul.f32 %v669_v29, %v604_v31  ;;  %v591_v34 = vmax.f32 %v553_v32, 0.0 }
  0xa1   : > { %v679_v35 = vmul.f32 %v662_v22, %v591_v34  ;;  %2128 = vtanh.f32 %v692_v33  ;;  %v2127_v49 = vpop.eup %2126  ;;  %v657_v34 = vrot.slane %v2313_v19, 3 }
  0xa2   : > { %v587_v37 = vpop.f32.mrf.mxu2 }
  0xa3   : > { %v588_v38 = vadd.f32 %v2311_v18, %v587_v37  ;;  %2130 = vtanh.f32 %v679_v35 }
  0xa4   : > { %v555_v39 = vpop.f32.mrf.mxu0 }
  0xa5   : > { %v605_v40 = vmax.f32 %v588_v38, 0.0  ;;  %v556_v41 = vadd.f32 %v2311_v18, %v555_v39 }
  0xa7   : > { %v693_v43 = vmul.f32 %v669_v29, %v605_v40  ;;  %v592_v44 = vmax.f32 %v556_v41, 0.0  ;;  %v2129_v51 = vpop.eup %2128 }
  0xa9   : > { %2132 = vtanh.f32 %v693_v43  ;;  %v680_v46 = vmul.f32 %v663_v42, %v592_v44  ;;  %v2131_v56 = vpop.eup %2130  ;;  %v665_v44 = vperm.slane %v657_v34, 0 }
  0xaa   : > { %v650_v47 = vpop.f32.mrf.mxu2 }
  0xab   : > { %2134 = vtanh.f32 %v680_v46  ;;  %v2326_v48 = vadd.f32 %v2123_v45, %v650_v47 }
  0xac   : > { %v557_v50 = vpop.f32.mrf.mxu0 }
  0xad   : > { %v717_v52 = vrot.slane %v2326_v48, 7  ;;  %v718_v53 = vperm.slane %v2326_v48, 0  ;;  %v558_v54 = vadd.f32 %v2311_v18, %v557_v50  ;;  %v711_v55 = vrot.slane %v2326_v48, 1 }
  0xae   : > { %v712_v17 = vrot.slane %v2326_v48, 2  ;;  %v713_v45 = vrot.slane %v2326_v48, 3  ;;  %v658_v50 = vrot.slane %v2313_v19, 4 }
  0xaf   : > { %v2133_v57 = vpop.eup %2132  ;;  %v725_v58 = vperm.slane %v717_v52, 0  ;;  %v734_v59 = vadd.f32 %v2127_v49, %v718_v53  ;;  %v735_v60 = vadd.f32 %v2131_v56, %v718_v53  ;;  %v593_v61 = vmax.f32 %v558_v54, 0.0 }
  0xb0   : > { %v719_v62 = vperm.slane %v711_v55, 0  ;;  %v720_v29 = vperm.slane %v712_v17, 0 }
  0xb1   : > { %v2135_v0 = vpop.eup %2134  ;;  %v748_v1 = vadd.f32 %v2129_v51, %v725_v58  ;;  %v2333_v2 = vadd.f32 %v2133_v57, %v725_v58  ;;  %v750_v3 = vmul.f32 0.5, %v734_v59  ;;  %v751_v4 = vmul.f32 0.5, %v735_v60 }
  0xb2   : > { %v681_v5 = vmul.f32 %v663_v42, %v593_v61  ;;  %v736_v6 = vadd.f32 %v2135_v0, %v719_v62  ;;  %v652_v7 = vpop.f32.mrf.mxu2 }
  0xb3   : > { %2136 = vtanh.f32 %v750_v3  ;;  %v2340_v46 = vmul.f32 0.5, %v748_v1 }
  0xb4   : > { %2138 = vtanh.f32 %v751_v4  ;;  %v752_v8 = vmul.f32 0.5, %v736_v6  ;;  %v560_v9 = vpop.f32.mrf.mxu0 }
  0xb5   : > { %v561_v10 = vadd.f32 %v2311_v18, %v560_v9  ;;  %2140 = vtanh.f32 %v681_v5 }
  0xb6   : > { %2142 = vtanh.f32 %v752_v8 }
  0xb7   : > { %v594_v12 = vmax.f32 %v561_v10, 0.0 }
  0xb9   : > { %v2137_v13 = vpop.eup %2136  ;;  %v682_v14 = vmul.f32 %v664_v11, %v594_v12 }
  0xba   : > { %v2139_v15 = vpop.eup %2138  ;;  %v782_v16 = vmul.f32 0.5, %v2137_v13 }
  0xbb   : > { %v783_v20 = vmul.f32 0.5, %v2139_v15  ;;  %2144 = vtanh.f32 %v682_v14  ;;  %v2141_v23 = vpop.eup %2140 }
  0xbc   : > { %v798_v21 = vadd.f32 0.5, %v782_v16  ;;  %v562_v22 = vpop.f32.mrf.mxu0  ;;  %v2143_v25 = vpop.eup %2142  ;;  %v737_v28 = vadd.f32 %v2141_v23, %v719_v62 }
  0xbd   : > { %v563_v24 = vadd.f32 %v2311_v18, %v562_v22  ;;  %v799_v26 = vadd.f32 0.5, %v783_v20  ;;  %v784_v30 = vmul.f32 0.5, %v2143_v25  ;;  %v721_v22 = vperm.slane %v713_v45, 0 }
  0xbe   : > { %v814_v27 = vpack.c.bf16 %v798_v21, %v798_v21  ;;  %v753_v33 = vmul.f32 0.5, %v737_v28 }
  0xbf   : > { %v595_v31 = vmax.f32 %v563_v24, 0.0  ;;  %v800_v36 = vadd.f32 0.5, %v784_v30  ;;  %v1235_v38 = vpack.c.bf16 %v799_v26, %v799_v26  ;;  %v714_v24 = vrot.slane %v2326_v48, 4 }
  0xc0   : > { %v839_v32 = vunpack.c.l.b16 %v814_v27  ;;  %2146 = vtanh.f32 %v753_v33 }
  0xc1   : > { %v2145_v35 = vpop.eup %2144  ;;  %v683_v37 = vmul.f32 %v664_v11, %v595_v31  ;;  %v815_v40 = vpack.c.bf16 %v800_v36, %v800_v36  ;;  %v2344_v51 = vunpack.c.l.b16 %v1235_v38  ;;  %v2368_v31 = vmul.f32 0.5, %v2333_v2 }
  0xc2   : > { %v738_v39 = vadd.f32 %v2145_v35, %v720_v29  ;;  %v847_v41 = vrot.slane %v839_v32, 1  ;;  %v946_v52 = vrot.slane %v839_v32, 2  ;;  %v995_v53 = vrot.slane %v839_v32, 3 }
  0xc3   : > { %2148 = vtanh.f32 %v683_v37  ;;  %v840_v47 = vunpack.c.l.b16 %v815_v40  ;;  %v1044_v60 = vrot.slane %v839_v32, 4  ;;  %v1093_v4 = vrot.slane %v839_v32, 5 }
  0xc4   : > { %v754_v42 = vmul.f32 0.5, %v738_v39  ;;  %v565_v43 = vpop.f32.mrf.mxu0  ;;  %v1142_v11 = vrot.slane %v839_v32, 6  ;;  %v1191_v16 = vrot.slane %v839_v32, 7  ;;  %v1313_v30 = vrot.slane %v2344_v51, 1 }
  0xc5   : > { %v566_v49 = vadd.f32 %v2311_v18, %v565_v43  ;;  %v2347_v55 = vsel %vm848_vm3, %v840_v47, %v847_v41  ;;  %v898_v56 = vrot.slane %v840_v47, 7  ;;  %v947_v57 = vrot.slane %v840_v47, 1 }
  0xc6   : > { %2150 = vtanh.f32 %v754_v42  ;;  %v2147_v58 = vpop.eup %2146  ;;  %v996_v59 = vrot.slane %v840_v47, 2  ;;  %v1045_v61 = vrot.slane %v840_v47, 3  ;;  %v1094_v62 = vrot.slane %v840_v47, 4 }
  0xc7   : > { %v596_v54 = vmax.f32 %v566_v49, 0.0  ;;  %v785_v0 = vmul.f32 0.5, %v2147_v58  ;;  %v2350_v3 = vsel %vm848_vm3, %v898_v56, %v839_v32  ;;  %v948_v6 = vsel %vm848_vm3, %v947_v57, %v946_v52 }
  0xc8   : > { %v997_v7 = vsel %vm848_vm3, %v996_v59, %v995_v53  ;;  %v2355_v8 = vsel %vm848_vm3, %v1045_v61, %v1044_v60  ;;  %v2358_v10 = vsel %vm848_vm3, %v1094_v62, %v1093_v4  ;;  %v1143_v15 = vrot.slane %v840_v47, 5 }
  0xc9   : > { %v2149_v63 = vpop.eup %2148  ;;  %v684_v1 = vmul.f32 %v665_v44, %v596_v54  ;;  %v801_v9 = vadd.f32 0.5, %v785_v0  ;;  %v1192_v17 = vrot.slane %v840_v47, 6  ;;  %v2370_v32 = vperm.slane %v658_v50, 0 }
  0xca   : > { %v739_v5 = vadd.f32 %v2149_v63, %v720_v29  ;;  %v1144_v25 = vsel %vm848_vm3, %v1143_v15, %v1142_v11  ;;  %v1362_v33 = vrot.slane %v2344_v51, 2  ;;  %v1411_v2 = vrot.slane %v2344_v51, 3 }
  0xcb   : > { %2152 = vtanh.f32 %v684_v1  ;;  %v1236_v20 = vpack.c.bf16 %v801_v9, %v801_v9  ;;  %v1193_v26 = vsel %vm848_vm3, %v1192_v17, %v1191_v16  ;;  %v2381_v43 = vperm.slane %v714_v24, 0 }
  0xcc   : > { %v2151_v12 = vpop.eup %2150  ;;  %v755_v13 = vmul.f32 0.5, %v739_v5  ;;  %v567_v14 = vpop.f32.mrf.mxu0  ;;  %v659_v50 = vrot.slane %v2313_v19, 5  ;;  %v1460_v1 = vrot.slane %v2344_v51, 4 }
  0xcd   : > { %v786_v21 = vmul.f32 0.5, %v2151_v12  ;;  %v568_v23 = vadd.f32 %v2311_v18, %v567_v14  ;;  %v2364_v27 = vunpack.c.l.b16 %v1236_v20 }
  0xce   : > { %2154 = vtanh.f32 %v755_v13 }
  0xcf   : > { %v802_v28 = vadd.f32 0.5, %v786_v21  ;;  %v597_v29 = vmax.f32 %v568_v23, 0.0  ;;  %v1264_v37 = vrot.slane %v2364_v27, 7  ;;  %v2376_v38 = vsel %vm848_vm3, %v2364_v27, %v1313_v30 }
  0xd0   : > { %v1363_v40 = vrot.slane %v2364_v27, 1  ;;  %v1412_v41 = vrot.slane %v2364_v27, 2  ;;  %v1461_v58 = vrot.slane %v2364_v27, 3 }
  0xd1   : > { %v2153_v34 = vpop.eup %2152  ;;  %v816_v35 = vpack.c.bf16 %v802_v28, %v802_v28  ;;  %v685_v36 = vmul.f32 %v665_v44, %v597_v29  ;;  %v1265_v44 = vsel %vm848_vm3, %v1264_v37, %v2344_v51  ;;  %v1510_v28 = vrot.slane %v2364_v27, 4 }
  0xd2   : > { %v740_v39 = vadd.f32 %v2153_v34, %v721_v22  ;;  %v1364_v52 = vsel %vm848_vm3, %v1363_v40, %v1362_v33  ;;  %v1413_v53 = vsel %vm848_vm3, %v1412_v41, %v1411_v2  ;;  %v1559_v29 = vrot.slane %v2364_v27, 5 }
  0xd3   : > { %v841_v42 = vunpack.c.l.b16 %v816_v35  ;;  %2156 = vtanh.f32 %v685_v36 }
  0xd4   : > { %v2155_v45 = vpop.eup %2154  ;;  %v756_v47 = vmul.f32 0.5, %v740_v39  ;;  %v570_v49 = vpop.f32.mrf.mxu0 }
  0xd5   : > { %v787_v54 = vmul.f32 0.5, %v2155_v45  ;;  %v571_v56 = vadd.f32 %v2311_v18, %v570_v49  ;;  %v850_v57 = vrot.slane %v841_v42, 7  ;;  %v900_v59 = vrot.slane %v841_v42, 6 }
  0xd6   : > { %2158 = vtanh.f32 %v756_v47  ;;  %v2391_v60 = vsel %vm851_vm4, %v841_v42, %v948_v6  ;;  %v998_v61 = vrot.slane %v841_v42, 1  ;;  %v1047_v9 = vrot.slane %v841_v42, 2 }
  0xd7   : > { %v803_v62 = vadd.f32 0.5, %v787_v54  ;;  %v598_v63 = vmax.f32 %v571_v56, 0.0  ;;  %v2395_v0 = vsel %vm851_vm4, %v850_v57, %v2347_v55  ;;  %v2400_v4 = vsel %vm851_vm4, %v900_v59, %v2350_v3 }
  0xd8   : > { %v2403_v5 = vsel %vm851_vm4, %v998_v61, %v997_v7  ;;  %v1509_v6 = vrot.slane %v2344_v51, 5  ;;  %v1096_v14 = vrot.slane %v841_v42, 3  ;;  %v1145_v15 = vrot.slane %v841_v42, 4 }
  0xd9   : > { %v2157_v11 = vpop.eup %2156  ;;  %v1237_v12 = vpack.c.bf16 %v803_v62, %v803_v62  ;;  %v686_v13 = vmul.f32 %v2370_v32, %v598_v63  ;;  %v2409_v16 = vsel %vm851_vm4, %v1047_v9, %v2355_v8  ;;  %v1194_v17 = vrot.slane %v841_v42, 5 }
  0xda   : > { %v741_v55 = vadd.f32 %v2157_v11, %v721_v22  ;;  %v1462_v3 = vsel %vm848_vm3, %v1461_v58, %v1460_v1  ;;  %v2416_v7 = vsel %vm851_vm4, %v1096_v14, %v2358_v10  ;;  %v2419_v21 = vsel %vm851_vm4, %v1145_v15, %v1144_v25 }
  0xdb   : > { %v2412_v20 = vunpack.c.l.b16 %v1237_v12  ;;  %2160 = vtanh.f32 %v686_v13  ;;  %v2422_v8 = vsel %vm851_vm4, %v1194_v17, %v1193_v26  ;;  %v1558_v26 = vrot.slane %v2344_v51, 6 }
  0xdc   : > { %v2159_v23 = vpop.eup %2158  ;;  %v757_v22 = vmul.f32 0.5, %v741_v55  ;;  %v572_v24 = vpop.f32.mrf.mxu0  ;;  %v1511_v42 = vsel %vm848_vm3, %v1510_v28, %v1509_v6  ;;  %v1607_v45 = vrot.slane %v2344_v51, 7  ;;  %v1608_v57 = vrot.slane %v2364_v27, 6 }
  0xdd   : > { %v788_v30 = vmul.f32 0.5, %v2159_v23  ;;  %v573_v33 = vadd.f32 %v2311_v18, %v572_v24  ;;  %v1266_v34 = vrot.slane %v2412_v20, 6  ;;  %v1315_v10 = vrot.slane %v2412_v20, 7 }
  0xde   : > { %2162 = vtanh.f32 %v757_v22  ;;  %v2431_v25 = vsel %vm851_vm4, %v2412_v20, %v1364_v52  ;;  %v1414_v35 = vrot.slane %v2412_v20, 1  ;;  %v1463_v41 = vrot.slane %v2412_v20, 2 }
  0xdf   : > { %v804_v36 = vadd.f32 0.5, %v788_v30  ;;  %v599_v37 = vmax.f32 %v573_v33, 0.0  ;;  %v2436_v39 = vsel %vm851_vm4, %v1266_v34, %v1265_v44  ;;  %v2440_v40 = vsel %vm851_vm4, %v1315_v10, %v2376_v38 }
  0xe0   : > { %v2443_v2 = vsel %vm851_vm4, %v1414_v35, %v1413_v53  ;;  %v1512_v44 = vrot.slane %v2412_v20, 3  ;;  %v1560_v54 = vsel %vm848_vm3, %v1559_v29, %v1558_v26  ;;  %v2453_v56 = vsel %vm851_vm4, %v1463_v41, %v1462_v3 }
  0xe1   : > { %v2161_v47 = vpop.eup %2160  ;;  %v817_v49 = vpack.c.bf16 %v804_v36, %v804_v36  ;;  %v687_v52 = vmul.f32 %v2370_v32, %v599_v37  ;;  %v1561_v53 = vrot.slane %v2412_v20, 4  ;;  %v667_v51 = vperm.slane %v659_v50, 0 }
  0xe2   : > { %v742_v38 = vadd.f32 %v2161_v47, %v2381_v43  ;;  %v2460_v32 = vsel %vm851_vm4, %v1512_v44, %v1511_v42  ;;  %v1609_v1 = vsel %vm848_vm3, %v1608_v57, %v1607_v45  ;;  %v1610_v9 = vrot.slane %v2412_v20, 5 }
  0xe3   : > { %v842_v58 = vunpack.c.l.b16 %v817_v49  ;;  %2164 = vtanh.f32 %v687_v52  ;;  %v2463_v63 = vsel %vm851_vm4, %v1561_v53, %v1560_v54 }
  0xe4   : > { %v2163_v59 = vpop.eup %2162  ;;  %v758_v61 = vmul.f32 0.5, %v742_v38  ;;  %v575_v62 = vpop.f32.mrf.mxu0 }
  0xe5   : > { %v789_v6 = vmul.f32 0.5, %v2163_v59  ;;  %v576_v27 = vadd.f32 %v2311_v18, %v575_v62  ;;  %v853_v11 = vrot.slane %v842_v58, 6  ;;  %v902_v12 = vrot.slane %v842_v58, 5 }
  0xe6   : > { %2166 = vtanh.f32 %v758_v61  ;;  %v950_v50 = vrot.slane %v842_v58, 7  ;;  %v2470_v13 = vsel %vm854_vm5, %v842_v58, %v2403_v5  ;;  %v1049_v14 = vrot.slane %v842_v58, 1 }
  0xe7   : > { %v805_v15 = vadd.f32 0.5, %v789_v6  ;;  %v600_v55 = vmax.f32 %v576_v27, 0.0  ;;  %v2474_v17 = vsel %vm854_vm5, %v853_v11, %v2395_v0  ;;  %v2478_v3 = vsel %vm854_vm5, %v902_v12, %v2400_v4 }
  0xe8   : > { %2168 = vtanh.f32 %v2340_v46  ;;  %v2483_v20 = vsel %vm854_vm5, %v950_v50, %v2391_v60  ;;  %v2487_v5 = vsel %vm854_vm5, %v1049_v14, %v2409_v16  ;;  %v1098_v23 = vrot.slane %v842_v58, 2  ;;  %v2075_v50 = vld [vmem:[%s2872_s8 + $0x8] sm:$0xff] }
  0xe9   : > { %v2165_v22 = vpop.eup %2164  ;;  %v1238_v24 = vpack.c.bf16 %v805_v15, %v805_v15  ;;  %v688_v28 = vmul.f32 %v667_v51, %v600_v55  ;;  %v1147_v0 = vrot.slane %v842_v58, 3  ;;  %v1196_v29 = vrot.slane %v842_v58, 4  ;;  %934 = vmatpush.bf16.msrb.mxu1 %v2075_v50 }
  0xea   : > { %v743_v30 = vadd.f32 %v2165_v22, %v2381_v43  ;;  %v715_v4 = vrot.slane %v2326_v48, 5  ;;  %v2493_v46 = vsel %vm854_vm5, %v1098_v23, %v2416_v7  ;;  %v2496_v60 = vsel %vm851_vm4, %v1610_v9, %v1609_v1 }
  0xeb   : > { %v2498_v33 = vunpack.c.l.b16 %v1238_v24  ;;  %2170 = vtanh.f32 %v688_v28  ;;  %v2502_v16 = vsel %vm854_vm5, %v1147_v0, %v2419_v21  ;;  %v2506_v34 = vsel %vm854_vm5, %v1196_v29, %v2422_v8 }
  0xec   : > { %v2167_v43 = vpop.eup %2166  ;;  %v759_v10 = vmul.f32 0.5, %v743_v30  ;;  %v577_v35 = vpop.f32.mrf.mxu0  ;;  %v723_v37 = vperm.slane %v715_v4, 0  ;;  %v660_v8 = vrot.slane %v2313_v19, 6  ;;  %v716_v1 = vrot.slane %v2326_v48, 6  ;;  %v2079_v48 = vld [vmem:[%s2872_s8 + $0x28] sm:$0xff] }
  0xed   : > { %v790_v26 = vmul.f32 0.5, %v2167_v43  ;;  %v578_v7 = vadd.f32 %v2311_v18, %v577_v35  ;;  %v1268_v41 = vrot.slane %v2498_v33, 5  ;;  %v1317_v42 = vrot.slane %v2498_v33, 6  ;;  %982 = vmatpush.bf16.msra.mxu2 %v2079_v48  ;;  %v2078_v35 = vld [vmem:[%s2872_s8 + $0x20] sm:$0xff] }
  0xee   : > { %v2169_v36 = vpop.eup %2168  ;;  %2172 = vtanh.f32 %v759_v10  ;;  %v1366_v52 = vrot.slane %v2498_v33, 7  ;;  %v1465_v19 = vrot.slane %v2498_v33, 1  ;;  %v2537_v62 = vperm.slane %v660_v8, 0 }
  0xef   : > { %2174 = vtanh.f32 %v2368_v31  ;;  %v806_v21 = vadd.f32 0.5, %v790_v26  ;;  %v601_v45 = vmax.f32 %v578_v7, 0.0  ;;  %v2515_v47 = vsel %vm854_vm5, %v1268_v41, %v2436_v39 }
  0xf0   : > { %v2519_v49 = vsel %vm854_vm5, %v1317_v42, %v2440_v40  ;;  %v2525_v31 = vsel %vm854_vm5, %v2498_v33, %v2443_v2  ;;  %v796_v53 = vmul.f32 0.5, %v2169_v36  ;;  %v2530_v39 = vsel %vm854_vm5, %v1366_v52, %v2431_v25  ;;  %v2083_v52 = vld [vmem:[%s2872_s8 + $0x48] sm:$0xff] }
  0xf1   : > { %v2171_v44 = vpop.eup %2170  ;;  %v818_v54 = vpack.c.bf16 %v806_v21, %v806_v21  ;;  %v689_v38 = vmul.f32 %v667_v51, %v601_v45  ;;  %v1514_v40 = vrot.slane %v2498_v33, 2  ;;  %v2535_v51 = vsel %vm854_vm5, %v1465_v19, %v2453_v56  ;;  %v2077_v56 = vld [vmem:[%s2872_s8 + $0x18] sm:$0xff]  ;;  %983 = vmatpush.bf16.msra.mxu2 %v2078_v35 }
  0xf2   : > { %v744_v57 = vadd.f32 %v2171_v44, %v723_v37  ;;  %891 = vmatpush.bf16.msra.mxu3 %v2077_v56  ;;  %v1563_v29 = vrot.slane %v2498_v33, 3  ;;  %v2589_v36 = vadd.f32 0.5, %v796_v53  ;;  %v2595_v45 = vperm.slane %v716_v1, 0  ;;  %v2085_v19 = vld [vmem:[%s2872_s8 + $0x58] sm:$0xff] }
  0xf3   : > { %v843_v58 = vunpack.c.l.b16 %v818_v54  ;;  %2176 = vtanh.f32 %v689_v38  ;;  %v2542_v25 = vsel %vm854_vm5, %v1514_v40, %v2460_v32  ;;  %v1612_v48 = vrot.slane %v2498_v33, 4 }
  0xf4   : > { %v2173_v59 = vpop.eup %2172  ;;  %v760_v2 = vmul.f32 0.5, %v744_v57  ;;  %v580_v61 = vpop.f32.mrf.mxu0  ;;  %v821_v33 = vpack.c.bf16 %v2589_v36, %v2589_v36 }
  0xf5   : > { %v2175_v9 = vpop.eup %2174  ;;  %v791_v6 = vmul.f32 0.5, %v2173_v59  ;;  %v581_v27 = vadd.f32 %v2311_v18, %v580_v61  ;;  %v856_v11 = vrot.slane %v843_v58, 5  ;;  %v904_v12 = vrot.slane %v843_v58, 4  ;;  %1129 = vmatpush.bf16.msrb.mxu2 %v2085_v19  ;;  %v2084_v61 = vld [vmem:[%s2872_s8 + $0x50] sm:$0xff] }
  0xf6   : > { %2178 = vtanh.f32 %v760_v2  ;;  %v952_v32 = vrot.slane %v843_v58, 6  ;;  %v1001_v14 = vrot.slane %v843_v58, 7  ;;  %v2556_v15 = vsel %vm857_vm6, %v843_v58, %v2487_v5 }
  0xf7   : > { %v807_v55 = vadd.f32 0.5, %v791_v6  ;;  %v602_v23 = vmax.f32 %v581_v27, 0.0  ;;  %v2560_v22 = vsel %vm857_vm6, %v856_v11, %v2474_v17  ;;  %v2564_v24 = vsel %vm857_vm6, %v904_v12, %v2478_v3 }
  0xf8   : > { %v2568_v28 = vsel %vm857_vm6, %v952_v32, %v2483_v20  ;;  %v2572_v5 = vsel %vm857_vm6, %v1001_v14, %v2470_v13  ;;  %v1100_v0 = vrot.slane %v843_v58, 1  ;;  %v1149_v3 = vrot.slane %v843_v58, 2  ;;  %v2076_v20 = vld [vmem:[%s2872_s8 + $0x10] sm:$0xff]  ;;  %v2074_v13 = vld [vmem:[%s2872_s8] sm:$0xff] }
  0xf9   : > { %v2177_v30 = vpop.eup %2176  ;;  %v1239_v17 = vpack.c.bf16 %v807_v55, %v807_v55  ;;  %v690_v4 = vmul.f32 %v2537_v62, %v602_v23  ;;  %v797_v43 = vmul.f32 0.5, %v2175_v9  ;;  %v1198_v7 = vrot.slane %v843_v58, 3  ;;  %892 = vmatpush.bf16.msra.mxu3 %v2076_v20  ;;  %935 = vmatpush.bf16.msrb.mxu1 %v2074_v13 }
  0xfa   : > { %v745_v10 = vadd.f32 %v2177_v30, %v723_v37  ;;  %v2587_v26 = vsel %vm857_vm6, %v1100_v0, %v2493_v46  ;;  %v2593_v41 = vsel %vm857_vm6, %v1149_v3, %v2502_v16  ;;  %v2081_v46 = vld [vmem:[%s2872_s8 + $0x38] sm:$0xff]  ;;  %v1564_v16 = vsel %vm854_vm5, %v1563_v29, %v2463_v63  ;;  %v2082_v63 = vld [vmem:[%s2872_s8 + $0x40] sm:$0xff]  ;;  %1130 = vmatpush.bf16.msrb.mxu2 %v2084_v61 }
  0xfb   : > { %v1260_v37 = vunpack.c.l.b16 %v1239_v17  ;;  %2180 = vtanh.f32 %v690_v4  ;;  %v2605_v44 = vsel %vm857_vm6, %v1198_v7, %v2506_v34  ;;  %v2080_v34 = vld [vmem:[%s2872_s8 + $0x30] sm:$0xff]  ;;  %v1613_v14 = vsel %vm854_vm5, %v1612_v48, %v2496_v60 }
  0xfc   : > { %v2179_v42 = vpop.eup %2178  ;;  %v761_v21 = vmul.f32 0.5, %v745_v10  ;;  %v582_v8 = vpop.f32.mrf.mxu0  ;;  %v813_v55 = vadd.f32 0.5, %v797_v43 }
  0xfd   : > { %v792_v54 = vmul.f32 0.5, %v2179_v42  ;;  %v583_v38 = vadd.f32 %v2311_v18, %v582_v8  ;;  %v1270_v53 = vrot.slane %v1260_v37, 4  ;;  %v1319_v57 = vrot.slane %v1260_v37, 5  ;;  %1031 = vmatpush.bf16.msrb.mxu3 %v2081_v46  ;;  %1080 = vmatpush.bf16.msra.mxu1 %v2083_v52 }
  0xfe   : > { %2182 = vtanh.f32 %v761_v21  ;;  %v1368_v40 = vrot.slane %v1260_v37, 6  ;;  %v1417_v18 = vrot.slane %v1260_v37, 7  ;;  %v2621_v58 = vsel %vm857_vm6, %v1260_v37, %v2535_v51 }
  0xff   : > { %v808_v59 = vadd.f32 0.5, %v792_v54  ;;  %v603_v2 = vmax.f32 %v583_v38, 0.0  ;;  %v1271_v1 = vsel %vm857_vm6, %v1270_v53, %v2515_v47  ;;  %v1320_v9 = vsel %vm857_vm6, %v1319_v57, %v2519_v49 }
 0x100   : > { %v2632_v6 = vsel %vm857_vm6, %v1368_v40, %v2530_v39  ;;  %v2636_v51 = vsel %vm857_vm6, %v1417_v18, %v2525_v31  ;;  %v1516_v27 = vrot.slane %v1260_v37, 1  ;;  %v1565_v11 = vrot.slane %v1260_v37, 2 }
 0x101   : > { %v2181_v12 = vpop.eup %2180  ;;  %v819_v56 = vpack.c.bf16 %v808_v59, %v808_v59  ;;  %v691_v50 = vmul.f32 %v2537_v62, %v603_v2  ;;  %v1614_v47 = vrot.slane %v1260_v37, 3  ;;  %1032 = vmatpush.bf16.msrb.mxu3 %v2080_v34  ;;  %1081 = vmatpush.bf16.msra.mxu1 %v2082_v63  ;;  %v1242_v46 = vpack.c.bf16 %v813_v55, %v813_v55 }
 0x102   : > { %v746_v32 = vadd.f32 %v2181_v12, %v2595_v45  ;;  %v1517_v49 = vsel %vm857_vm6, %v1516_v27, %v2542_v25  ;;  %v1566_v39 = vsel %vm857_vm6, %v1565_v11, %v1564_v16 }
 0x103   : > { %v844_v31 = vunpack.c.l.b16 %v819_v56  ;;  %2184 = vtanh.f32 %v691_v50  ;;  %v1615_v0 = vsel %vm857_vm6, %v1614_v47, %v1613_v14  ;;  %v2695_v2 = vunpack.c.l.b16 %v1242_v46 }
 0x104   : > { %v2183_v62 = vpop.eup %2182  ;;  %v762_v23 = vmul.f32 0.5, %v746_v32 }
 0x105   : > { %v793_v29 = vmul.f32 0.5, %v2183_v62  ;;  %v859_v30 = vrot.slane %v844_v31, 4  ;;  %v906_v25 = vrot.slane %v844_v31, 3  ;;  %v954_v17 = vrot.slane %v844_v31, 5 }
 0x106   : > { %2186 = vtanh.f32 %v762_v23  ;;  %v1003_v4 = vrot.slane %v844_v31, 6  ;;  %v1052_v3 = vrot.slane %v844_v31, 7  ;;  %v2651_v10 = vsel %vm860_vm7, %v844_v31, %v2587_v26 }
 0x107   : > { %v809_v60 = vadd.f32 0.5, %v793_v29  ;;  %v861_v43 = vsel %vm860_vm7, %v859_v30, %v2560_v22  ;;  %v907_v20 = vsel %vm860_vm7, %v906_v25, %v2564_v24  ;;  %v955_v13 = vsel %vm860_vm7, %v954_v17, %v2568_v28 }
 0x108   : > { %v1004_v35 = vsel %vm860_vm7, %v1003_v4, %v2572_v5  ;;  %v2663_v7 = vsel %vm860_vm7, %v1052_v3, %v2556_v15  ;;  %v1151_v36 = vrot.slane %v844_v31, 1  ;;  %v1200_v26 = vrot.slane %v844_v31, 2  ;;  %v2087_v3 = vld [vmem:[%s2872_s8 + $0x68] sm:$0xff] }
 0x109   : > { %v2185_v37 = vpop.eup %2184  ;;  %v1240_v42 = vpack.c.bf16 %v809_v60, %v809_v60  ;;  %v2672_v5 = vunpack.c.l.b16 %v821_v33  ;;  %v1276_v46 = vrot.slane %v2695_v2, 1 }
 0x10a   : > { %v747_v21 = vadd.f32 %v2185_v37, %v2595_v45  ;;  %v1152_v22 = vsel %vm860_vm7, %v1151_v36, %v2593_v41  ;;  %v2670_v24 = vsel %vm860_vm7, %v1200_v26, %v2605_v44 }
 0x10b   : > { %v1261_v28 = vunpack.c.l.b16 %v1240_v42  ;;  %v910_v27 = vrot.slane %v2672_v5, 1  ;;  %v1056_v12 = vrot.slane %v2672_v5, 5  ;;  %v1105_v50 = vrot.slane %v2672_v5, 6 }
 0x10c   : > { %v2187_v8 = vpop.eup %2186  ;;  %v763_v15 = vmul.f32 0.5, %v747_v21  ;;  %v1154_v48 = vrot.slane %v2672_v5, 7 }
 0x10d   : > { %v794_v52 = vmul.f32 0.5, %v2187_v8  ;;  %v1272_v16 = vrot.slane %v1261_v28, 3  ;;  %v1321_v54 = vrot.slane %v1261_v28, 4  ;;  %v2675_v38 = vsel %vm860_vm7, %v1261_v28, %v1517_v49 }
 0x10e   : > { %2188 = vtanh.f32 %v763_v15  ;;  %v1370_v45 = vrot.slane %v1261_v28, 5  ;;  %v1419_v19 = vrot.slane %v1261_v28, 6  ;;  %v1468_v41 = vrot.slane %v1261_v28, 7 }
 0x10f   : > { %v810_v53 = vadd.f32 0.5, %v794_v52  ;;  %v2678_v44 = vsel %vm860_vm7, %v1272_v16, %v1271_v1  ;;  %v2681_v57 = vsel %vm860_vm7, %v1321_v54, %v1320_v9  ;;  %v1567_v34 = vrot.slane %v1261_v28, 1  ;;  %v2088_v16 = vld [vmem:[%s2872_s8 + $0x70] sm:$0xff]  ;;  %v2090_v54 = vld [vmem:[%s2872_s8 + $0x80] sm:$0xff] }
 0x110   : > { %v2685_v63 = vsel %vm860_vm7, %v1370_v45, %v2632_v6  ;;  %v2689_v40 = vsel %vm860_vm7, %v1419_v19, %v2636_v51  ;;  %v2693_v18 = vsel %vm860_vm7, %v1468_v41, %v2621_v58  ;;  %v1616_v59 = vrot.slane %v1261_v28, 2 }
 0x111   : > { %v820_v61 = vpack.c.bf16 %v810_v53, %v810_v53  ;;  %v1568_v1 = vsel %vm860_vm7, %v1567_v34, %v1566_v39  ;;  %v865_v9 = vrot.slane %v2672_v5, 2  ;;  %v958_v6 = vrot.slane %v2672_v5, 3 }
 0x112   : > { %v2702_v11 = vsel %vm860_vm7, %v1616_v59, %v1615_v0  ;;  %v1007_v58 = vrot.slane %v2672_v5, 4  ;;  %v1325_v15 = vrot.slane %v2695_v2, 2  ;;  %v1374_v52 = vrot.slane %v2695_v2, 3 }
 0x113   : > { %v845_v51 = vunpack.c.l.b16 %v820_v61 }
 0x114   : > { %v2189_v56 = vpop.eup %2188 }
 0x115   : > { %v795_v47 = vmul.f32 0.5, %v2189_v56  ;;  %v862_v32 = vrot.slane %v845_v51, 3  ;;  %v908_v49 = vrot.slane %v845_v51, 2  ;;  %v956_v39 = vrot.slane %v845_v51, 4 }
 0x116   : > { %v1005_v31 = vrot.slane %v845_v51, 5  ;;  %v1054_v14 = vrot.slane %v845_v51, 6  ;;  %v1103_v62 = vrot.slane %v845_v51, 7  ;;  %v1153_v55 = vsel %vm863_vm8, %v845_v51, %v1152_v22 }
 0x117   : > { %v811_v33 = vadd.f32 0.5, %v795_v47  ;;  %v864_v23 = vsel %vm863_vm8, %v862_v32, %v861_v43  ;;  %v909_v0 = vsel %vm863_vm8, %v908_v49, %v907_v20  ;;  %v957_v29 = vsel %vm863_vm8, %v956_v39, %v955_v13  ;;  %v2089_v20 = vld [vmem:[%s2872_s8 + $0x78] sm:$0xff]  ;;  %v2091_v13 = vld [vmem:[%s2872_s8 + $0x88] sm:$0xff] }
 0x118   : > { %v867_v30 = vsel %vm866_vm9, %v865_v9, %v864_v23  ;;  %v911_v25 = vsel %vm866_vm9, %v910_v27, %v909_v0  ;;  %v959_v17 = vsel %vm866_vm9, %v958_v6, %v957_v29  ;;  %v1006_v4 = vsel %vm863_vm8, %v1005_v31, %v1004_v35  ;;  %v2096_v0 = vld [vmem:[%s2872_s8 + $0xb0] sm:$0xff]  ;;  %v2099_v29 = vld [vmem:[%s2872_s8 + $0xc8] sm:$0xff] }
 0x119   : > { %v1241_v60 = vpack.c.bf16 %v811_v33, %v811_v33  ;;  %v868_v36 = vpack.c.b16 %v867_v30, %v867_v30  ;;  %v912_v26 = vpack.c.b16 %v911_v25, %v911_v25  ;;  %v960_v43 = vpack.c.b16 %v959_v17, %v959_v17  ;;  %v2097_v33 = vld [vmem:[%s2872_s8 + $0xb8] sm:$0xff] }
 0x11a   : > { %v1008_v37 = vsel %vm866_vm9, %v1007_v58, %v1006_v4  ;;  %v1055_v35 = vsel %vm863_vm8, %v1054_v14, %v2663_v7  ;;  %v1104_v42 = vsel %vm863_vm8, %v1103_v62, %v2651_v10  ;;  %v2731_v21 = vsel %vm866_vm9, %v1154_v48, %v1153_v55  ;;  %v2086_v7 = vld [vmem:[%s2872_s8 + $0x60] sm:$0xff]  ;;  %v2095_v55 = vld [vmem:[%s2872_s8 + $0xa8] sm:$0xff]  ;;  %v2101_v17 = vld [vmem:[%s2872_s8 + $0xd8] sm:$0xff] }
 0x11b   : > { %v1262_v22 = vunpack.c.l.b16 %v1241_v60  ;;  %1852 = vmatmul.msk.bf16.vlgmr.msra.gmra.mxu3 %vm881_vm10, %v868_v36  ;;  %1861 = vmatmul.msk.bf16.vlgmr.msrb.gmra.mxu1 %vm881_vm10, %v912_v26  ;;  %v1057_v28 = vsel %vm866_vm9, %v1056_v12, %v1055_v35  ;;  %v1106_v8 = vsel %vm866_vm9, %v1105_v50, %v1104_v42  ;;  %v1202_v10 = vrot.slane %v845_v51, 1  ;;  %v2103_v4 = vld [vmem:[%s2872_s8 + $0xe8] sm:$0xff]  ;;  %v2098_v60 = vld [vmem:[%s2872_s8 + $0xc0] sm:$0xff]  ;;  %v2100_v36 = vld [vmem:[%s2872_s8 + $0xd0] sm:$0xff] }
 0x11c   : > { %1874 = vmatmul.msk.bf16.vlgmr.msra.gmra.mxu2 %vm881_vm10, %v960_v43  ;;  %1178 = vmatpush.bf16.msra.mxu3 %v2087_v3  ;;  %v1570_v56 = vrot.slane %v2695_v2, 7  ;;  %v1009_v62 = vpack.c.b16 %v1008_v37, %v1008_v37  ;;  %v1107_v23 = vpack.c.b16 %v1106_v8, %v1106_v8  ;;  %v1156_v30 = vpack.c.b16 %v2731_v21, %v2731_v21  ;;  %v2102_v26 = vld [vmem:[%s2872_s8 + $0xe0] sm:$0xff]  ;;  %v2105_v43 = vld [vmem:[%s2872_s8 + $0xf8] sm:$0xff]  ;;  %v2104_v35 = vld [vmem:[%s2872_s8 + $0xf0] sm:$0xff] }
 0x11d   : > { %1227 = vmatpush.bf16.msrb.mxu1 %v2089_v20  ;;  %1300 = vmatpush.bf16.msra.mxu2 %v2091_v13  ;;  %v1274_v45 = vrot.slane %v1262_v22, 2  ;;  %v1323_v19 = vrot.slane %v1262_v22, 3  ;;  %v1372_v41 = vrot.slane %v1262_v22, 4  ;;  %v1569_v53 = vsel %vm863_vm8, %v1262_v22, %v1568_v1 }
 0x11e   : > { %v1203_v34 = vsel %vm863_vm8, %v1202_v10, %v2670_v24  ;;  %v1421_v59 = vrot.slane %v1262_v22, 5  ;;  %v1470_v61 = vrot.slane %v1262_v22, 6  ;;  %v1519_v9 = vrot.slane %v1262_v22, 7 }
 0x11f   : > { %v1204_v27 = vsel %vm866_vm9, %v2672_v5, %v1203_v34  ;;  %v1275_v6 = vsel %vm863_vm8, %v1274_v45, %v2678_v44  ;;  %v1324_v51 = vsel %vm863_vm8, %v1323_v19, %v2681_v57  ;;  %v1373_v58 = vsel %vm863_vm8, %v1372_v41, %v2685_v63 }
 0x120   : > { %1179 = vmatpush.bf16.msra.mxu3 %v2086_v7  ;;  %v1277_v1 = vsel %vm866_vm9, %v1276_v46, %v1275_v6  ;;  %v1326_v24 = vsel %vm866_vm9, %v1325_v15, %v1324_v51  ;;  %v1375_v12 = vsel %vm866_vm9, %v1374_v52, %v1373_v58  ;;  %v1423_v5 = vrot.slane %v2695_v2, 4 }
 0x121   : > { %1228 = vmatpush.bf16.msrb.mxu1 %v2088_v16  ;;  %1301 = vmatpush.bf16.msra.mxu2 %v2090_v54  ;;  %v1472_v44 = vrot.slane %v2695_v2, 5  ;;  %v1521_v57 = vrot.slane %v2695_v2, 6  ;;  %v1618_v50 = vrot.slane %v1262_v22, 1  ;;  %v1422_v63 = vsel %vm863_vm8, %v1421_v59, %v2689_v40 }
 0x122   : > { %v1471_v48 = vsel %vm863_vm8, %v1470_v61, %v2693_v18  ;;  %v1520_v47 = vsel %vm863_vm8, %v1519_v9, %v2675_v38  ;;  %v1571_v32 = vsel %vm866_vm9, %v1570_v56, %v1569_v53  ;;  %v1424_v49 = vsel %vm866_vm9, %v1423_v5, %v1422_v63  ;;  %v2093_v18 = vld [vmem:[%s2872_s8 + $0x98] sm:$0xff]  ;;  %v2108_v56 = vld [vmem:[%s2874_s10 + $0x10] sm:$0xff] }
 0x123   : > { %v1473_v39 = vsel %vm866_vm9, %v1472_v44, %v1471_v48  ;;  %v1522_v31 = vsel %vm866_vm9, %v1521_v57, %v1520_v47  ;;  %v1619_v14 = vsel %vm863_vm8, %v1618_v50, %v2702_v11  ;;  %v1058_v38 = vpack.c.b16 %v1057_v28, %v1057_v28  ;;  %v2094_v11 = vld [vmem:[%s2872_s8 + $0xa0] sm:$0xff] }
 0x124   : > { %v1620_v40 = vsel %vm866_vm9, %v2695_v2, %v1619_v14  ;;  %v2092_v2 = vld [vmem:[%s2872_s8 + $0x90] sm:$0xff]  ;;  %v1205_v25 = vpack.c.b16 %v1204_v27, %v1204_v27  ;;  %v1278_v3 = vpack.c.b16 %v1277_v1, %v1277_v1  ;;  %v1327_v20 = vpack.c.b16 %v1326_v24, %v1326_v24  ;;  %v2109_v24 = vld [vmem:[%s2874_s10 + $0x18] sm:$0xff] }
 0x125   : > { %v1376_v13 = vpack.c.b16 %v1375_v12, %v1375_v12  ;;  %v1425_v37 = vpack.c.b16 %v1424_v49, %v1424_v49  ;;  %v1474_v42 = vpack.c.b16 %v1473_v39, %v1473_v39  ;;  %v1523_v21 = vpack.c.b16 %v1522_v31, %v1522_v31  ;;  %v2106_v31 = vld [vmem:[%s2874_s10] sm:$0xff] }
 0x126   : > { %v1572_v22 = vpack.c.b16 %v1571_v32, %v1571_v32  ;;  %v1621_v28 = vpack.c.b16 %v1620_v40, %v1620_v40  ;;  %v2107_v32 = vld [vmem:[%s2874_s10 + $0x8] sm:$0xff] }
 0x12b   : > { %1887 = vmatmul.msk.bf16.vlgmr.msrb.gmra.mxu3 %vm881_vm10, %v1009_v62  ;;  %1900 = vmatmul.msk.bf16.vlgmr.msra.gmra.mxu1 %vm881_vm10, %v1058_v38 }
 0x12c   : > { %1913 = vmatmul.msk.bf16.vlgmr.msrb.gmra.mxu2 %vm881_vm10, %v1107_v23  ;;  %1349 = vmatpush.bf16.msrb.mxu3 %v2093_v18 }
 0x12d   : > { %1398 = vmatpush.bf16.msra.mxu1 %v2095_v55  ;;  %1447 = vmatpush.bf16.msrb.mxu2 %v2097_v33 }
 0x130   : > { %1350 = vmatpush.bf16.msrb.mxu3 %v2092_v2 }
 0x131   : > { %1399 = vmatpush.bf16.msra.mxu1 %v2094_v11  ;;  %1448 = vmatpush.bf16.msrb.mxu2 %v2096_v0 }
 0x13b   : > { %1926 = vmatmul.msk.bf16.vlgmr.msra.gmra.mxu3 %vm881_vm10, %v1156_v30  ;;  %1939 = vmatmul.msk.bf16.vlgmr.msrb.gmra.mxu1 %vm881_vm10, %v1205_v25  ;;  %v2124_v25 = vld [vmem:[%s2873_s9] ss:$0 sm:$0xff] }
 0x13c   : > { %1952 = vmatmul.msk.bf16.vlgmr.msra.gmra.mxu2 %vm881_vm10, %v1278_v3  ;;  %1496 = vmatpush.bf16.msra.mxu3 %v2099_v29 }
 0x13d   : > { %1545 = vmatpush.bf16.msrb.mxu1 %v2101_v17  ;;  %1594 = vmatpush.bf16.msra.mxu2 %v2103_v4 }
 0x140   : > { %1497 = vmatpush.bf16.msra.mxu3 %v2098_v60 }
 0x141   : > { %1546 = vmatpush.bf16.msrb.mxu1 %v2100_v36  ;;  %1595 = vmatpush.bf16.msra.mxu2 %v2102_v26 }
 0x14b   : > { %1965 = vmatmul.msk.bf16.vlgmr.msrb.gmra.mxu3 %vm881_vm10, %v1327_v20  ;;  %1978 = vmatmul.msk.bf16.vlgmr.msra.gmra.mxu1 %vm881_vm10, %v1376_v13 }
 0x14c   : > { %1991 = vmatmul.msk.bf16.vlgmr.msrb.gmra.mxu2 %vm881_vm10, %v1425_v37  ;;  %1643 = vmatpush.bf16.msrb.mxu3 %v2105_v43  ;;  %v2125_v43 = vld [vmem:[%s2875_s11] ss:$0 sm:$0xff] }
 0x14d   : > { %1702 = vmatpush.bf16.msra.mxu1 %v2109_v24 }
 0x150   : > { %1644 = vmatpush.bf16.msrb.mxu3 %v2104_v35 }
 0x151   : > { %1703 = vmatpush.bf16.msra.mxu1 %v2108_v56 }
 0x155   : > { %1704 = vmatpush.bf16.msra.mxu1 %v2107_v32 }
 0x159   : > { %1705 = vmatpush.bf16.msra.mxu1 %v2106_v31 }
 0x15b   : > { %2004 = vmatmul.msk.bf16.vlgmr.msra.gmra.mxu3 %vm881_vm10, %v1474_v42  ;;  %2017 = vmatmul.msk.bf16.vlgmr.msrb.gmra.mxu1 %vm881_vm10, %v1523_v21 }
 0x15c   : > { %2030 = vmatmul.msk.bf16.vlgmr.msra.gmra.mxu2 %vm881_vm10, %v1572_v22 }
 0x16b   : > { %2043 = vmatmul.msk.bf16.vlgmr.msrb.gmra.mxu3 %vm881_vm10, %v1621_v28 }
 0x198   : > { %v937_v8 = vpop.f32.mrf.mxu1 }
 0x19e   : > { %v894_v7 = vpop.f32.mrf.mxu3 }
 0x19f   : > { %v985_v10 = vpop.f32.mrf.mxu2  ;;  %v938_v27 = vadd.f32 %v937_v8, %v894_v7 }
 0x1a0   : > { %v939_v46 = vpop.f32.mrf.mxu1 }
 0x1a1   : > { %v989_v6 = vadd.f32 %v985_v10, %v938_v27 }
 0x1a6   : > { %v896_v15 = vpop.f32.mrf.mxu3 }
 0x1a7   : > { %v987_v52 = vpop.f32.mrf.mxu2 }
 0x1a8   : > { %v1083_v16 = vpop.f32.mrf.mxu1 }
 0x1ae   : > { %v1034_v54 = vpop.f32.mrf.mxu3 }
 0x1af   : > { %v1132_v45 = vpop.f32.mrf.mxu2  ;;  %v1038_v58 = vadd.f32 %v1034_v54, %v989_v6 }
 0x1b0   : > { %v1085_v19 = vpop.f32.mrf.mxu1 }
 0x1b1   : > { %v1087_v5 = vadd.f32 %v1083_v16, %v1038_v58 }
 0x1b3   : > { %v1136_v57 = vadd.f32 %v1132_v45, %v1087_v5 }
 0x1b6   : > { %v1036_v41 = vpop.f32.mrf.mxu3 }
 0x1b7   : > { %v1134_v53 = vpop.f32.mrf.mxu2 }
 0x1b8   : > { %v1230_v34 = vpop.f32.mrf.mxu1 }
 0x1be   : > { %v1181_v59 = vpop.f32.mrf.mxu3 }
 0x1bf   : > { %v1303_v61 = vpop.f32.mrf.mxu2  ;;  %v1185_v48 = vadd.f32 %v1181_v59, %v1136_v57 }
 0x1c0   : > { %v1232_v9 = vpop.f32.mrf.mxu1 }
 0x1c1   : > { %v1234_v47 = vadd.f32 %v1230_v34, %v1185_v48 }
 0x1c3   : > { %v1307_v40 = vadd.f32 %v1303_v61, %v1234_v47 }
 0x1c6   : > { %v1183_v51 = vpop.f32.mrf.mxu3 }
 0x1c7   : > { %v1305_v1 = vpop.f32.mrf.mxu2 }
 0x1c8   : > { %v1401_v12 = vpop.f32.mrf.mxu1 }
 0x1ce   : > { %v1352_v44 = vpop.f32.mrf.mxu3 }
 0x1cf   : > { %v1450_v50 = vpop.f32.mrf.mxu2  ;;  %v1356_v18 = vadd.f32 %v1352_v44, %v1307_v40 }
 0x1d0   : > { %v1403_v63 = vpop.f32.mrf.mxu1 }
 0x1d1   : > { %v1405_v38 = vadd.f32 %v1401_v12, %v1356_v18 }
 0x1d3   : > { %v1454_v23 = vadd.f32 %v1450_v50, %v1405_v38 }
 0x1d6   : > { %v1354_v49 = vpop.f32.mrf.mxu3 }
 0x1d7   : > { %v1452_v39 = vpop.f32.mrf.mxu2 }
 0x1d8   : > { %v1548_v14 = vpop.f32.mrf.mxu1 }
 0x1de   : > { %v1499_v62 = vpop.f32.mrf.mxu3 }
 0x1df   : > { %v1597_v55 = vpop.f32.mrf.mxu2  ;;  %v1503_v2 = vadd.f32 %v1499_v62, %v1454_v23 }
 0x1e0   : > { %v1550_v33 = vpop.f32.mrf.mxu1 }
 0x1e1   : > { %v1552_v29 = vadd.f32 %v1548_v14, %v1503_v2 }
 0x1e3   : > { %v1601_v30 = vadd.f32 %v1597_v55, %v1552_v29 }
 0x1e6   : > { %v1501_v11 = vpop.f32.mrf.mxu3 }
 0x1e7   : > { %v1599_v0 = vpop.f32.mrf.mxu2 }
 0x1ee   : > { %v1646_v17 = vpop.f32.mrf.mxu3 }
 0x1ef   : > { %v1650_v4 = vadd.f32 %v1646_v17, %v1601_v30 }
 0x1f1   : > { %v1655_v3 = vadd.f32 %v2124_v25, %v1650_v4 }
 0x1f3   : > { %v1656_v60 = vmax.f32 %v1655_v3, 0.0 }
 0x1f5   : > { %v1657_v36 = vpack.c.bf16 %v1656_v60, %v1656_v60 }
 0x1f6   : > { %v1648_v26 = vpop.f32.mrf.mxu3 }
 0x1f7   : > { %2060 = vmatmul.msk.bf16.vlgmr.msra.gmra.mxu1 %vm1694_vm11, %v1657_v36 }
 0x274   : > { %v1707_v20 = vpop.f32.mrf.mxu1 }
 0x275   : > { %v1708_v13 = vadd.f32 %v2125_v43, %v1707_v20 }
 0x277   : > { %1711 = vst [vmem:[%s430_s13] sm:$0xff] %v1708_v13 }
 0x27c   : > { %v1709_v37 = vpop.f32.mrf.mxu1 }
 0x27d PF: > { %s22_s21 = sadd.s32 1, %s2196_s21  }
 0x27e   : > { %p19_p5 = scmp.ge.s32.totalorder %s22_s21, 4  }
 0x280   :  { %21 = sbr.rel (!%p19_p5) target bundleno = 1 (0x1), region = 116 }

</bundles_post_ra>
